<compile_context>
chip_gen: v7x
topology: tpu7x:2x2x1
jax: 0.10.0
libtpu: 0.0.40
codegen_flags: <defaults>
</compile_context>

<pallas_src>
import functools

import jax
import jax.numpy as jnp
from jax import lax
from jax.experimental import pallas as pl
from jax.experimental.pallas import tpu as pltpu


# ------------------------------ Pallas kernel ------------------------------ #

def _cognitive_attention_kernel(q_ref, k_ref, v_ref,
                                wqkv1_ref, bqkv1_ref, wo1_ref, bo1_ref,
                                wq2_ref, bq2_ref, wk2_ref, bk2_ref,
                                wv2_ref, bv2_ref, wo2_ref, bo2_ref,
                                gamma_ref, beta_ref,
                                o_ref, *, num_heads):
    q = q_ref[...].astype(jnp.float32)          # (B, D)  original input (residual)
    k_in = k_ref[...].astype(jnp.float32)
    v_in = v_ref[...].astype(jnp.float32)
    b, d = q.shape
    hd = d // num_heads

    def mha(qp, kp, vp, wo, bo):
        # qp already carries the 1/sqrt(hd) scale (folded into the Q weights).
        # Accumulate per-head output projections instead of concatenating the
        # head contexts along the lane axis: ctx @ wo == sum_h ctx_h @ wo[h*hd:...]
        out = None
        for h in range(num_heads):
            sl = slice(h * hd, (h + 1) * hd)
            qh, kh, vh = qp[:, sl], kp[:, sl], vp[:, sl]          # (B, hd)
            # scores (B, B) = qh @ kh^T (contract last dims, no transpose op)
            sc = lax.dot_general(qh, kh, (((1,), (1,)), ((), ())),
                                 preferred_element_type=jnp.float32)
            sc = sc - jnp.max(sc, axis=-1, keepdims=True)
            p = jnp.exp(sc)
            p = p * pl.reciprocal(jnp.sum(p, axis=-1, keepdims=True),
                                  approx=True)
            head = jnp.dot(p, vh, preferred_element_type=jnp.float32)  # (B, hd)
            part = jnp.dot(head, wo[sl, :],
                           preferred_element_type=jnp.float32)          # (B, D)
            out = part if out is None else out + part
        return out + bo                                                  # (B, D)

    # ---- self attention (fused QKV projection: one (B,D)@(D,3D) matmul) ----
    qkv = (jnp.dot(q, wqkv1_ref[...], preferred_element_type=jnp.float32)
           + bqkv1_ref[...])                                             # (B, 3D)
    self_out = mha(qkv[:, 0:d], qkv[:, d:2 * d], qkv[:, 2 * d:3 * d],
                   wo1_ref[...], bo1_ref[...])

    # ---- cross attention (Q from self_out, K/V from the original k/v) ----
    q2 = jnp.dot(self_out, wq2_ref[...],
                 preferred_element_type=jnp.float32) + bq2_ref[...]
    k2 = jnp.dot(k_in, wk2_ref[...],
                 preferred_element_type=jnp.float32) + bk2_ref[...]
    v2 = jnp.dot(v_in, wv2_ref[...],
                 preferred_element_type=jnp.float32) + bv2_ref[...]
    cross_out = mha(q2, k2, v2, wo2_ref[...], bo2_ref[...])

    # ---- residual + LayerNorm (nn.LayerNorm: biased variance, eps=1e-5) ----
    res = cross_out + q
    mu = jnp.mean(res, axis=-1, keepdims=True)
    cen = res - mu
    var = jnp.mean(cen * cen, axis=-1, keepdims=True)
    y = cen * lax.rsqrt(var + 1e-5)
    o_ref[...] = (y * gamma_ref[...] + beta_ref[...]).astype(o_ref.dtype)


# ------------------------ Parameter prep (outside jit) ---------------------- #

_WEIGHT_ORDER = ("wqkv1", "bqkv1", "wo1", "bo1", "wq2", "bq2", "wk2", "bk2",
                 "wv2", "bv2", "wo2", "bo2", "gamma", "beta")


def prepare_params(params, num_heads, weight_dtype=jnp.bfloat16):
    """Pack / pre-scale / down-cast weights ONCE, outside the per-call jit path."""
    sa, ca = params["self_attn"], params["cross_attn"]
    d = sa["wq"].shape[0]
    hd = d // num_heads
    scale = 1.0 / float(hd) ** 0.5

    # Fold the softmax scale into the Q projections (weights AND biases).
    wqkv1 = jnp.concatenate([sa["wq"] * scale, sa["wk"], sa["wv"]], axis=1)
    bqkv1 = jnp.concatenate([sa["bq"] * scale, sa["bk"], sa["bv"]])

    row = lambda x: x.reshape(1, -1).astype(jnp.float32)
    w = lambda x: x.astype(weight_dtype)
    return dict(
        wqkv1=w(wqkv1), bqkv1=row(bqkv1),
        wo1=w(sa["wo"]), bo1=row(sa["bo"]),
        wq2=w(ca["wq"] * scale), bq2=row(ca["bq"] * scale),
        wk2=w(ca["wk"]), bk2=row(ca["bk"]),
        wv2=w(ca["wv"]), bv2=row(ca["bv"]),
        wo2=w(ca["wo"]), bo2=row(ca["bo"]),
        gamma=row(params["ln_gamma"]), beta=row(params["ln_beta"]),
    )


# -------------------------------- Wrapper ---------------------------------- #

def cognitive_attention_pallas(q, k, v, prep, *, num_heads):
    """q/k/v: (B, D) for a single module instance, or (G, B, D) for G
    independent instances processed under one pallas_call (grid over G)."""
    squeeze = q.ndim == 2
    if squeeze:
        q, k, v = q[None], k[None], v[None]
    g, b, d = q.shape
    assert d % num_heads == 0, "input_dim must be divisible by num_heads"

    weights = [prep[name] for name in _WEIGHT_ORDER]

    def act_spec():
        return pl.BlockSpec((None, b, d), lambda i: (i, 0, 0))

    # Weights: full-array blocks with a constant block index -> resident in
    # VMEM across all grid iterations (no per-step re-DMA).
    w_specs = [pl.BlockSpec(x.shape, lambda i: (0, 0)) for x in weights]

    flops = g * (16 * b * d * d + 8 * b * b * d)
    transcendentals = g * (2 * num_heads * b * b + 2 * b)
    bytes_accessed = (sum(x.size * x.dtype.itemsize for x in weights)
                      + 4 * g * b * d * q.dtype.itemsize)

    kernel = functools.partial(_cognitive_attention_kernel,
                               num_heads=num_heads)
    out = pl.pallas_call(
        kernel,
        out_shape=jax.ShapeDtypeStruct((g, b, d), q.dtype),
        grid=(g,),
        in_specs=[act_spec(), act_spec(), act_spec()] + w_specs,
        out_specs=pl.BlockSpec((None, b, d), lambda i: (i, 0, 0)),
        compiler_params=pltpu.CompilerParams(
            dimension_semantics=("parallel",)),
        cost_estimate=pl.CostEstimate(flops=flops,
                                      transcendentals=transcendentals,
                                      bytes_accessed=bytes_accessed),
    )(q, k, v, *weights)
    return out[0] if squeeze else out


# ------------------------------- Parameters -------------------------------- #

def init_params(key, input_dim, num_heads=4):
    def linear(k, din, dout):
        kw, kb = jax.random.split(k)
        lim = 1.0 / din ** 0.5
        wmat = jax.random.uniform(kw, (din, dout), jnp.float32, -lim, lim)
        bias = jax.random.uniform(kb, (dout,), jnp.float32, -lim, lim)
        return wmat, bias

    def mha_params(k):
        kq, kk_, kv, ko = jax.random.split(k, 4)
        wq, bq = linear(kq, input_dim, input_dim)
        wk, bk = linear(kk_, input_dim, input_dim)
        wv, bv = linear(kv, input_dim, input_dim)
        wo, bo = linear(ko, input_dim, input_dim)
        return dict(wq=wq, bq=bq, wk=wk, bk=bk, wv=wv, bv=bv, wo=wo, bo=bo)

    k1, k2, k3 = jax.random.split(key, 3)
    kg, kb = jax.random.split(k3)
    return dict(
        self_attn=mha_params(k1),
        cross_attn=mha_params(k2),
        ln_gamma=1.0 + 0.1 * jax.random.normal(kg, (input_dim,), jnp.float32),
        ln_beta=0.1 * jax.random.normal(kb, (input_dim,), jnp.float32),
    )


# ---------------------------- Pure-JAX reference --------------------------- #

def _mha_ref(q, k, v, p, num_heads):
    b, d = q.shape
    hd = d // num_heads
    qq = q @ p["wq"] + p["bq"]
    kk = k @ p["wk"] + p["bk"]
    vv = v @ p["wv"] + p["bv"]
    qh = qq.reshape(b, num_heads, hd).transpose(1, 0, 2)
    kh = kk.reshape(b, num_heads, hd).transpose(1, 0, 2)
    vh = vv.reshape(b, num_heads, hd).transpose(1, 0, 2)
    sc = jnp.einsum("hbd,hcd->hbc", qh, kh) / hd ** 0.5
    attn = jax.nn.softmax(sc, axis=-1)
    out = jnp.einsum("hbc,hcd->hbd", attn, vh)
    out = out.transpose(1, 0, 2).reshape(b, d)
    return out @ p["wo"] + p["bo"]


def cognitive_attention_ref(q, k, v, params, *, num_heads):
    so = _mha_ref(q, q, q, params["self_attn"], num_heads)
    co = _mha_ref(so, k, v, params["cross_attn"], num_heads)
    res = co + q
    mu = res.mean(-1, keepdims=True)
    var = ((res - mu) ** 2).mean(-1, keepdims=True)
    y = (res - mu) / jnp.sqrt(var + 1e-5)
    return y * params["ln_gamma"] + params["ln_beta"]


# ---------------------------------- Main ------------------------------------ #

if __name__ == "__main__":
    key = jax.random.PRNGKey(0)
    kq, kk_, kv, kp = jax.random.split(key, 4)

    batch, input_dim, num_heads, groups = 8, 128, 4, 4
    params = init_params(kp, input_dim, num_heads)
    prep = prepare_params(params, num_heads)          # packed once, outside jit

    fn = jax.jit(functools.partial(cognitive_attention_pallas,
                                   num_heads=num_heads))

    # --- single (B, D) instance (module semantics) ---
    q = jax.random.normal(kq, (batch, input_dim), jnp.float32)
    k = jax.random.normal(kk_, (batch, input_dim), jnp.float32)
    v = jax.random.normal(kv, (batch, input_dim), jnp.float32)
    out = jax.block_until_ready(fn(q, k, v, prep))
    ref = cognitive_attention_ref(q, k, v, params, num_heads=num_heads)
    assert out.shape == (batch, input_dim)
    err = float(jnp.max(jnp.abs(out - ref)))
    if not (err < 3e-2):
        raise AssertionError(f"Pallas kernel mismatch vs reference: {err}")

    # --- batched (G, B, D): one pallas_call, parallel grid over instances ---
    kg1, kg2, kg3 = jax.random.split(jax.random.PRNGKey(1), 3)
    qg = jax.random.normal(kg1, (groups, batch, input_dim), jnp.float32)
    kg = jax.random.normal(kg2, (groups, batch, input_dim), jnp.float32)
    vg = jax.random.normal(kg3, (groups, batch, input_dim), jnp.float32)
    outg = jax.block_until_ready(fn(qg, kg, vg, prep))
    refg = jax.vmap(lambda a, bb, c: cognitive_attention_ref(
        a, bb, c, params, num_heads=num_heads))(qg, kg, vg)
    assert outg.shape == (groups, batch, input_dim)
    errg = float(jnp.max(jnp.abs(outg - refg)))
    if not (errg < 3e-2):
        raise AssertionError(f"Pallas batched kernel mismatch vs reference: {errg}")

    print("KERNEL_OK")
</pallas_src>

<mosaic_0001>
module attributes {stable_mosaic.version = 11 : i64} {
  func.func @_cognitive_attention_kernel(%arg0: i32, %arg1: memref<1x8x128xf32, #tpu.memory_space<vmem>>, %arg2: memref<1x8x128xf32, #tpu.memory_space<vmem>>, %arg3: memref<1x8x128xf32, #tpu.memory_space<vmem>>, %arg4: memref<128x384xbf16, #tpu.memory_space<vmem>>, %arg5: memref<1x384xf32, #tpu.memory_space<vmem>>, %arg6: memref<128x128xbf16, #tpu.memory_space<vmem>>, %arg7: memref<1x128xf32, #tpu.memory_space<vmem>>, %arg8: memref<128x128xbf16, #tpu.memory_space<vmem>>, %arg9: memref<1x128xf32, #tpu.memory_space<vmem>>, %arg10: memref<128x128xbf16, #tpu.memory_space<vmem>>, %arg11: memref<1x128xf32, #tpu.memory_space<vmem>>, %arg12: memref<128x128xbf16, #tpu.memory_space<vmem>>, %arg13: memref<1x128xf32, #tpu.memory_space<vmem>>, %arg14: memref<128x128xbf16, #tpu.memory_space<vmem>>, %arg15: memref<1x128xf32, #tpu.memory_space<vmem>>, %arg16: memref<1x128xf32, #tpu.memory_space<vmem>>, %arg17: memref<1x128xf32, #tpu.memory_space<vmem>>, %arg18: memref<1x8x128xf32, #tpu.memory_space<vmem>>) attributes {dimension_semantics = [#tpu.dimension_semantics<parallel>], iteration_bounds = array<i64: 1>, scalar_prefetch = 0 : i64, scratch_operands = 0 : i64, tpu.core_type = #tpu.core_type<tc>, window_params = [{transform_indices = @transform_0, window_bounds = array<i64: 1, 8, 128>}, {transform_indices = @transform_1, window_bounds = array<i64: 1, 8, 128>}, {transform_indices = @transform_2, window_bounds = array<i64: 1, 8, 128>}, {pipeline_mode = #tpu.pipeline_mode<synchronous>, transform_indices = @transform_3, window_bounds = array<i64: 128, 384>}, {pipeline_mode = #tpu.pipeline_mode<synchronous>, transform_indices = @transform_4, window_bounds = array<i64: 1, 384>}, {pipeline_mode = #tpu.pipeline_mode<synchronous>, transform_indices = @transform_5, window_bounds = array<i64: 128, 128>}, {pipeline_mode = #tpu.pipeline_mode<synchronous>, transform_indices = @transform_6, window_bounds = array<i64: 1, 128>}, {pipeline_mode = #tpu.pipeline_mode<synchronous>, transform_indices = @transform_7, window_bounds = array<i64: 128, 128>}, {pipeline_mode = #tpu.pipeline_mode<synchronous>, transform_indices = @transform_8, window_bounds = array<i64: 1, 128>}, {pipeline_mode = #tpu.pipeline_mode<synchronous>, transform_indices = @transform_9, window_bounds = array<i64: 128, 128>}, {pipeline_mode = #tpu.pipeline_mode<synchronous>, transform_indices = @transform_10, window_bounds = array<i64: 1, 128>}, {pipeline_mode = #tpu.pipeline_mode<synchronous>, transform_indices = @transform_11, window_bounds = array<i64: 128, 128>}, {pipeline_mode = #tpu.pipeline_mode<synchronous>, transform_indices = @transform_12, window_bounds = array<i64: 1, 128>}, {pipeline_mode = #tpu.pipeline_mode<synchronous>, transform_indices = @transform_13, window_bounds = array<i64: 128, 128>}, {pipeline_mode = #tpu.pipeline_mode<synchronous>, transform_indices = @transform_14, window_bounds = array<i64: 1, 128>}, {pipeline_mode = #tpu.pipeline_mode<synchronous>, transform_indices = @transform_15, window_bounds = array<i64: 1, 128>}, {pipeline_mode = #tpu.pipeline_mode<synchronous>, transform_indices = @transform_16, window_bounds = array<i64: 1, 128>}, {transform_indices = @transform_17, window_bounds = array<i64: 1, 8, 128>}]} {
    %c0 = arith.constant 0 : index
    %c0_0 = arith.constant 0 : index
    %c0_1 = arith.constant 0 : index
    %0 = vector.load %arg1[%c0, %c0_0, %c0_1] : memref<1x8x128xf32, #tpu.memory_space<vmem>>, vector<1x8x128xf32>
    %1 = vector.shape_cast %0 : vector<1x8x128xf32> to vector<8x128xf32>
    %c0_2 = arith.constant 0 : index
    %c0_3 = arith.constant 0 : index
    %c0_4 = arith.constant 0 : index
    %2 = vector.load %arg2[%c0_2, %c0_3, %c0_4] : memref<1x8x128xf32, #tpu.memory_space<vmem>>, vector<1x8x128xf32>
    %3 = vector.shape_cast %2 : vector<1x8x128xf32> to vector<8x128xf32>
    %c0_5 = arith.constant 0 : index
    %c0_6 = arith.constant 0 : index
    %c0_7 = arith.constant 0 : index
    %4 = vector.load %arg3[%c0_5, %c0_6, %c0_7] : memref<1x8x128xf32, #tpu.memory_space<vmem>>, vector<1x8x128xf32>
    %5 = vector.shape_cast %4 : vector<1x8x128xf32> to vector<8x128xf32>
    %c0_8 = arith.constant 0 : index
    %c0_9 = arith.constant 0 : index
    %6 = vector.load %arg4[%c0_8, %c0_9] : memref<128x384xbf16, #tpu.memory_space<vmem>>, vector<128x384xbf16>
    %cst = arith.constant dense<0.000000e+00> : vector<8x384xf32>
    %7 = tpu.matmul %1, %6, %cst {dimension_numbers = #tpu.dot_dimension_numbers<[1], [0], [0], [1], [0, 0, 1, 1], [], []>} : vector<8x128xf32>, vector<128x384xbf16>, vector<8x384xf32> -> vector<8x384xf32>
    %c0_10 = arith.constant 0 : index
    %c0_11 = arith.constant 0 : index
    %8 = vector.load %arg5[%c0_10, %c0_11] : memref<1x384xf32, #tpu.memory_space<vmem>>, vector<1x384xf32>
    %9 = vector.broadcast %8 : vector<1x384xf32> to vector<8x384xf32>
    %10 = arith.addf %7, %9 : vector<8x384xf32>
    %11 = vector.extract_strided_slice %10 {offsets = [0, 0], sizes = [8, 128], strides = [1, 1]} : vector<8x384xf32> to vector<8x128xf32>
    %12 = vector.extract_strided_slice %10 {offsets = [0, 128], sizes = [8, 128], strides = [1, 1]} : vector<8x384xf32> to vector<8x128xf32>
    %13 = vector.extract_strided_slice %10 {offsets = [0, 256], sizes = [8, 128], strides = [1, 1]} : vector<8x384xf32> to vector<8x128xf32>
    %c0_12 = arith.constant 0 : index
    %c0_13 = arith.constant 0 : index
    %14 = vector.load %arg6[%c0_12, %c0_13] : memref<128x128xbf16, #tpu.memory_space<vmem>>, vector<128x128xbf16>
    %c0_14 = arith.constant 0 : index
    %c0_15 = arith.constant 0 : index
    %15 = vector.load %arg7[%c0_14, %c0_15] : memref<1x128xf32, #tpu.memory_space<vmem>>, vector<1x128xf32>
    %16 = vector.extract_strided_slice %11 {offsets = [0, 0], sizes = [8, 32], strides = [1, 1]} : vector<8x128xf32> to vector<8x32xf32>
    %17 = vector.extract_strided_slice %12 {offsets = [0, 0], sizes = [8, 32], strides = [1, 1]} : vector<8x128xf32> to vector<8x32xf32>
    %18 = vector.extract_strided_slice %13 {offsets = [0, 0], sizes = [8, 32], strides = [1, 1]} : vector<8x128xf32> to vector<8x32xf32>
    %cst_16 = arith.constant dense<0.000000e+00> : vector<8x8xf32>
    %19 = tpu.matmul %16, %17, %cst_16 {dimension_numbers = #tpu.dot_dimension_numbers<[1], [1], [0], [0], [0, 0, 1, 0], [], []>} : vector<8x32xf32>, vector<8x32xf32>, vector<8x8xf32> -> vector<8x8xf32>
    %cst_17 = arith.constant dense<0xFF800000> : vector<8xf32>
    %20 = vector.multi_reduction <maximumf>, %19, %cst_17 [1] : vector<8x8xf32> to vector<8xf32>
    %21 = vector.shape_cast %20 : vector<8xf32> to vector<8x1xf32>
    %22 = vector.broadcast %21 : vector<8x1xf32> to vector<8x8xf32>
    %23 = arith.subf %19, %22 : vector<8x8xf32>
    %24 = math.exp %23 : vector<8x8xf32>
    %cst_18 = arith.constant dense<0.000000e+00> : vector<8xf32>
    %25 = vector.multi_reduction <add>, %24, %cst_18 [1] : vector<8x8xf32> to vector<8xf32>
    %26 = vector.shape_cast %25 : vector<8xf32> to vector<8x1xf32>
    %27 = tpu.reciprocal %26 {approx = true} : vector<8x1xf32> -> vector<8x1xf32>
    %28 = vector.broadcast %27 : vector<8x1xf32> to vector<8x8xf32>
    %29 = arith.mulf %24, %28 : vector<8x8xf32>
    %cst_19 = arith.constant dense<0.000000e+00> : vector<8x32xf32>
    %30 = tpu.matmul %29, %18, %cst_19 {dimension_numbers = #tpu.dot_dimension_numbers<[1], [0], [0], [1], [0, 0, 1, 1], [], []>} : vector<8x8xf32>, vector<8x32xf32>, vector<8x32xf32> -> vector<8x32xf32>
    %31 = vector.extract_strided_slice %14 {offsets = [0, 0], sizes = [32, 128], strides = [1, 1]} : vector<128x128xbf16> to vector<32x128xbf16>
    %cst_20 = arith.constant dense<0.000000e+00> : vector<8x128xf32>
    %32 = tpu.matmul %30, %31, %cst_20 {dimension_numbers = #tpu.dot_dimension_numbers<[1], [0], [0], [1], [0, 0, 1, 1], [], []>} : vector<8x32xf32>, vector<32x128xbf16>, vector<8x128xf32> -> vector<8x128xf32>
    %33 = vector.extract_strided_slice %11 {offsets = [0, 32], sizes = [8, 32], strides = [1, 1]} : vector<8x128xf32> to vector<8x32xf32>
    %34 = vector.extract_strided_slice %12 {offsets = [0, 32], sizes = [8, 32], strides = [1, 1]} : vector<8x128xf32> to vector<8x32xf32>
    %35 = vector.extract_strided_slice %13 {offsets = [0, 32], sizes = [8, 32], strides = [1, 1]} : vector<8x128xf32> to vector<8x32xf32>
    %cst_21 = arith.constant dense<0.000000e+00> : vector<8x8xf32>
    %36 = tpu.matmul %33, %34, %cst_21 {dimension_numbers = #tpu.dot_dimension_numbers<[1], [1], [0], [0], [0, 0, 1, 0], [], []>} : vector<8x32xf32>, vector<8x32xf32>, vector<8x8xf32> -> vector<8x8xf32>
    %cst_22 = arith.constant dense<0xFF800000> : vector<8xf32>
    %37 = vector.multi_reduction <maximumf>, %36, %cst_22 [1] : vector<8x8xf32> to vector<8xf32>
    %38 = vector.shape_cast %37 : vector<8xf32> to vector<8x1xf32>
    %39 = vector.broadcast %38 : vector<8x1xf32> to vector<8x8xf32>
    %40 = arith.subf %36, %39 : vector<8x8xf32>
    %41 = math.exp %40 : vector<8x8xf32>
    %cst_23 = arith.constant dense<0.000000e+00> : vector<8xf32>
    %42 = vector.multi_reduction <add>, %41, %cst_23 [1] : vector<8x8xf32> to vector<8xf32>
    %43 = vector.shape_cast %42 : vector<8xf32> to vector<8x1xf32>
    %44 = tpu.reciprocal %43 {approx = true} : vector<8x1xf32> -> vector<8x1xf32>
    %45 = vector.broadcast %44 : vector<8x1xf32> to vector<8x8xf32>
    %46 = arith.mulf %41, %45 : vector<8x8xf32>
    %cst_24 = arith.constant dense<0.000000e+00> : vector<8x32xf32>
    %47 = tpu.matmul %46, %35, %cst_24 {dimension_numbers = #tpu.dot_dimension_numbers<[1], [0], [0], [1], [0, 0, 1, 1], [], []>} : vector<8x8xf32>, vector<8x32xf32>, vector<8x32xf32> -> vector<8x32xf32>
    %48 = vector.extract_strided_slice %14 {offsets = [32, 0], sizes = [32, 128], strides = [1, 1]} : vector<128x128xbf16> to vector<32x128xbf16>
    %cst_25 = arith.constant dense<0.000000e+00> : vector<8x128xf32>
    %49 = tpu.matmul %47, %48, %cst_25 {dimension_numbers = #tpu.dot_dimension_numbers<[1], [0], [0], [1], [0, 0, 1, 1], [], []>} : vector<8x32xf32>, vector<32x128xbf16>, vector<8x128xf32> -> vector<8x128xf32>
    %50 = arith.addf %32, %49 : vector<8x128xf32>
    %51 = vector.extract_strided_slice %11 {offsets = [0, 64], sizes = [8, 32], strides = [1, 1]} : vector<8x128xf32> to vector<8x32xf32>
    %52 = vector.extract_strided_slice %12 {offsets = [0, 64], sizes = [8, 32], strides = [1, 1]} : vector<8x128xf32> to vector<8x32xf32>
    %53 = vector.extract_strided_slice %13 {offsets = [0, 64], sizes = [8, 32], strides = [1, 1]} : vector<8x128xf32> to vector<8x32xf32>
    %cst_26 = arith.constant dense<0.000000e+00> : vector<8x8xf32>
    %54 = tpu.matmul %51, %52, %cst_26 {dimension_numbers = #tpu.dot_dimension_numbers<[1], [1], [0], [0], [0, 0, 1, 0], [], []>} : vector<8x32xf32>, vector<8x32xf32>, vector<8x8xf32> -> vector<8x8xf32>
    %cst_27 = arith.constant dense<0xFF800000> : vector<8xf32>
    %55 = vector.multi_reduction <maximumf>, %54, %cst_27 [1] : vector<8x8xf32> to vector<8xf32>
    %56 = vector.shape_cast %55 : vector<8xf32> to vector<8x1xf32>
    %57 = vector.broadcast %56 : vector<8x1xf32> to vector<8x8xf32>
    %58 = arith.subf %54, %57 : vector<8x8xf32>
    %59 = math.exp %58 : vector<8x8xf32>
    %cst_28 = arith.constant dense<0.000000e+00> : vector<8xf32>
    %60 = vector.multi_reduction <add>, %59, %cst_28 [1] : vector<8x8xf32> to vector<8xf32>
    %61 = vector.shape_cast %60 : vector<8xf32> to vector<8x1xf32>
    %62 = tpu.reciprocal %61 {approx = true} : vector<8x1xf32> -> vector<8x1xf32>
    %63 = vector.broadcast %62 : vector<8x1xf32> to vector<8x8xf32>
    %64 = arith.mulf %59, %63 : vector<8x8xf32>
    %cst_29 = arith.constant dense<0.000000e+00> : vector<8x32xf32>
    %65 = tpu.matmul %64, %53, %cst_29 {dimension_numbers = #tpu.dot_dimension_numbers<[1], [0], [0], [1], [0, 0, 1, 1], [], []>} : vector<8x8xf32>, vector<8x32xf32>, vector<8x32xf32> -> vector<8x32xf32>
    %66 = vector.extract_strided_slice %14 {offsets = [64, 0], sizes = [32, 128], strides = [1, 1]} : vector<128x128xbf16> to vector<32x128xbf16>
    %cst_30 = arith.constant dense<0.000000e+00> : vector<8x128xf32>
    %67 = tpu.matmul %65, %66, %cst_30 {dimension_numbers = #tpu.dot_dimension_numbers<[1], [0], [0], [1], [0, 0, 1, 1], [], []>} : vector<8x32xf32>, vector<32x128xbf16>, vector<8x128xf32> -> vector<8x128xf32>
    %68 = arith.addf %50, %67 : vector<8x128xf32>
    %69 = vector.extract_strided_slice %11 {offsets = [0, 96], sizes = [8, 32], strides = [1, 1]} : vector<8x128xf32> to vector<8x32xf32>
    %70 = vector.extract_strided_slice %12 {offsets = [0, 96], sizes = [8, 32], strides = [1, 1]} : vector<8x128xf32> to vector<8x32xf32>
    %71 = vector.extract_strided_slice %13 {offsets = [0, 96], sizes = [8, 32], strides = [1, 1]} : vector<8x128xf32> to vector<8x32xf32>
    %cst_31 = arith.constant dense<0.000000e+00> : vector<8x8xf32>
    %72 = tpu.matmul %69, %70, %cst_31 {dimension_numbers = #tpu.dot_dimension_numbers<[1], [1], [0], [0], [0, 0, 1, 0], [], []>} : vector<8x32xf32>, vector<8x32xf32>, vector<8x8xf32> -> vector<8x8xf32>
    %cst_32 = arith.constant dense<0xFF800000> : vector<8xf32>
    %73 = vector.multi_reduction <maximumf>, %72, %cst_32 [1] : vector<8x8xf32> to vector<8xf32>
    %74 = vector.shape_cast %73 : vector<8xf32> to vector<8x1xf32>
    %75 = vector.broadcast %74 : vector<8x1xf32> to vector<8x8xf32>
    %76 = arith.subf %72, %75 : vector<8x8xf32>
    %77 = math.exp %76 : vector<8x8xf32>
    %cst_33 = arith.constant dense<0.000000e+00> : vector<8xf32>
    %78 = vector.multi_reduction <add>, %77, %cst_33 [1] : vector<8x8xf32> to vector<8xf32>
    %79 = vector.shape_cast %78 : vector<8xf32> to vector<8x1xf32>
    %80 = tpu.reciprocal %79 {approx = true} : vector<8x1xf32> -> vector<8x1xf32>
    %81 = vector.broadcast %80 : vector<8x1xf32> to vector<8x8xf32>
    %82 = arith.mulf %77, %81 : vector<8x8xf32>
    %cst_34 = arith.constant dense<0.000000e+00> : vector<8x32xf32>
    %83 = tpu.matmul %82, %71, %cst_34 {dimension_numbers = #tpu.dot_dimension_numbers<[1], [0], [0], [1], [0, 0, 1, 1], [], []>} : vector<8x8xf32>, vector<8x32xf32>, vector<8x32xf32> -> vector<8x32xf32>
    %84 = vector.extract_strided_slice %14 {offsets = [96, 0], sizes = [32, 128], strides = [1, 1]} : vector<128x128xbf16> to vector<32x128xbf16>
    %cst_35 = arith.constant dense<0.000000e+00> : vector<8x128xf32>
    %85 = tpu.matmul %83, %84, %cst_35 {dimension_numbers = #tpu.dot_dimension_numbers<[1], [0], [0], [1], [0, 0, 1, 1], [], []>} : vector<8x32xf32>, vector<32x128xbf16>, vector<8x128xf32> -> vector<8x128xf32>
    %86 = arith.addf %68, %85 : vector<8x128xf32>
    %87 = vector.broadcast %15 : vector<1x128xf32> to vector<8x128xf32>
    %88 = arith.addf %86, %87 : vector<8x128xf32>
    %c0_36 = arith.constant 0 : index
    %c0_37 = arith.constant 0 : index
    %89 = vector.load %arg8[%c0_36, %c0_37] : memref<128x128xbf16, #tpu.memory_space<vmem>>, vector<128x128xbf16>
    %cst_38 = arith.constant dense<0.000000e+00> : vector<8x128xf32>
    %90 = tpu.matmul %88, %89, %cst_38 {dimension_numbers = #tpu.dot_dimension_numbers<[1], [0], [0], [1], [0, 0, 1, 1], [], []>} : vector<8x128xf32>, vector<128x128xbf16>, vector<8x128xf32> -> vector<8x128xf32>
    %c0_39 = arith.constant 0 : index
    %c0_40 = arith.constant 0 : index
    %91 = vector.load %arg9[%c0_39, %c0_40] : memref<1x128xf32, #tpu.memory_space<vmem>>, vector<1x128xf32>
    %92 = vector.broadcast %91 : vector<1x128xf32> to vector<8x128xf32>
    %93 = arith.addf %90, %92 : vector<8x128xf32>
    %c0_41 = arith.constant 0 : index
    %c0_42 = arith.constant 0 : index
    %94 = vector.load %arg10[%c0_41, %c0_42] : memref<128x128xbf16, #tpu.memory_space<vmem>>, vector<128x128xbf16>
    %cst_43 = arith.constant dense<0.000000e+00> : vector<8x128xf32>
    %95 = tpu.matmul %3, %94, %cst_43 {dimension_numbers = #tpu.dot_dimension_numbers<[1], [0], [0], [1], [0, 0, 1, 1], [], []>} : vector<8x128xf32>, vector<128x128xbf16>, vector<8x128xf32> -> vector<8x128xf32>
    %c0_44 = arith.constant 0 : index
    %c0_45 = arith.constant 0 : index
    %96 = vector.load %arg11[%c0_44, %c0_45] : memref<1x128xf32, #tpu.memory_space<vmem>>, vector<1x128xf32>
    %97 = vector.broadcast %96 : vector<1x128xf32> to vector<8x128xf32>
    %98 = arith.addf %95, %97 : vector<8x128xf32>
    %c0_46 = arith.constant 0 : index
    %c0_47 = arith.constant 0 : index
    %99 = vector.load %arg12[%c0_46, %c0_47] : memref<128x128xbf16, #tpu.memory_space<vmem>>, vector<128x128xbf16>
    %cst_48 = arith.constant dense<0.000000e+00> : vector<8x128xf32>
    %100 = tpu.matmul %5, %99, %cst_48 {dimension_numbers = #tpu.dot_dimension_numbers<[1], [0], [0], [1], [0, 0, 1, 1], [], []>} : vector<8x128xf32>, vector<128x128xbf16>, vector<8x128xf32> -> vector<8x128xf32>
    %c0_49 = arith.constant 0 : index
    %c0_50 = arith.constant 0 : index
    %101 = vector.load %arg13[%c0_49, %c0_50] : memref<1x128xf32, #tpu.memory_space<vmem>>, vector<1x128xf32>
    %102 = vector.broadcast %101 : vector<1x128xf32> to vector<8x128xf32>
    %103 = arith.addf %100, %102 : vector<8x128xf32>
    %c0_51 = arith.constant 0 : index
    %c0_52 = arith.constant 0 : index
    %104 = vector.load %arg14[%c0_51, %c0_52] : memref<128x128xbf16, #tpu.memory_space<vmem>>, vector<128x128xbf16>
    %c0_53 = arith.constant 0 : index
    %c0_54 = arith.constant 0 : index
    %105 = vector.load %arg15[%c0_53, %c0_54] : memref<1x128xf32, #tpu.memory_space<vmem>>, vector<1x128xf32>
    %106 = vector.extract_strided_slice %93 {offsets = [0, 0], sizes = [8, 32], strides = [1, 1]} : vector<8x128xf32> to vector<8x32xf32>
    %107 = vector.extract_strided_slice %98 {offsets = [0, 0], sizes = [8, 32], strides = [1, 1]} : vector<8x128xf32> to vector<8x32xf32>
    %108 = vector.extract_strided_slice %103 {offsets = [0, 0], sizes = [8, 32], strides = [1, 1]} : vector<8x128xf32> to vector<8x32xf32>
    %cst_55 = arith.constant dense<0.000000e+00> : vector<8x8xf32>
    %109 = tpu.matmul %106, %107, %cst_55 {dimension_numbers = #tpu.dot_dimension_numbers<[1], [1], [0], [0], [0, 0, 1, 0], [], []>} : vector<8x32xf32>, vector<8x32xf32>, vector<8x8xf32> -> vector<8x8xf32>
    %cst_56 = arith.constant dense<0xFF800000> : vector<8xf32>
    %110 = vector.multi_reduction <maximumf>, %109, %cst_56 [1] : vector<8x8xf32> to vector<8xf32>
    %111 = vector.shape_cast %110 : vector<8xf32> to vector<8x1xf32>
    %112 = vector.broadcast %111 : vector<8x1xf32> to vector<8x8xf32>
    %113 = arith.subf %109, %112 : vector<8x8xf32>
    %114 = math.exp %113 : vector<8x8xf32>
    %cst_57 = arith.constant dense<0.000000e+00> : vector<8xf32>
    %115 = vector.multi_reduction <add>, %114, %cst_57 [1] : vector<8x8xf32> to vector<8xf32>
    %116 = vector.shape_cast %115 : vector<8xf32> to vector<8x1xf32>
    %117 = tpu.reciprocal %116 {approx = true} : vector<8x1xf32> -> vector<8x1xf32>
    %118 = vector.broadcast %117 : vector<8x1xf32> to vector<8x8xf32>
    %119 = arith.mulf %114, %118 : vector<8x8xf32>
    %cst_58 = arith.constant dense<0.000000e+00> : vector<8x32xf32>
    %120 = tpu.matmul %119, %108, %cst_58 {dimension_numbers = #tpu.dot_dimension_numbers<[1], [0], [0], [1], [0, 0, 1, 1], [], []>} : vector<8x8xf32>, vector<8x32xf32>, vector<8x32xf32> -> vector<8x32xf32>
    %121 = vector.extract_strided_slice %104 {offsets = [0, 0], sizes = [32, 128], strides = [1, 1]} : vector<128x128xbf16> to vector<32x128xbf16>
    %cst_59 = arith.constant dense<0.000000e+00> : vector<8x128xf32>
    %122 = tpu.matmul %120, %121, %cst_59 {dimension_numbers = #tpu.dot_dimension_numbers<[1], [0], [0], [1], [0, 0, 1, 1], [], []>} : vector<8x32xf32>, vector<32x128xbf16>, vector<8x128xf32> -> vector<8x128xf32>
    %123 = vector.extract_strided_slice %93 {offsets = [0, 32], sizes = [8, 32], strides = [1, 1]} : vector<8x128xf32> to vector<8x32xf32>
    %124 = vector.extract_strided_slice %98 {offsets = [0, 32], sizes = [8, 32], strides = [1, 1]} : vector<8x128xf32> to vector<8x32xf32>
    %125 = vector.extract_strided_slice %103 {offsets = [0, 32], sizes = [8, 32], strides = [1, 1]} : vector<8x128xf32> to vector<8x32xf32>
    %cst_60 = arith.constant dense<0.000000e+00> : vector<8x8xf32>
    %126 = tpu.matmul %123, %124, %cst_60 {dimension_numbers = #tpu.dot_dimension_numbers<[1], [1], [0], [0], [0, 0, 1, 0], [], []>} : vector<8x32xf32>, vector<8x32xf32>, vector<8x8xf32> -> vector<8x8xf32>
    %cst_61 = arith.constant dense<0xFF800000> : vector<8xf32>
    %127 = vector.multi_reduction <maximumf>, %126, %cst_61 [1] : vector<8x8xf32> to vector<8xf32>
    %128 = vector.shape_cast %127 : vector<8xf32> to vector<8x1xf32>
    %129 = vector.broadcast %128 : vector<8x1xf32> to vector<8x8xf32>
    %130 = arith.subf %126, %129 : vector<8x8xf32>
    %131 = math.exp %130 : vector<8x8xf32>
    %cst_62 = arith.constant dense<0.000000e+00> : vector<8xf32>
    %132 = vector.multi_reduction <add>, %131, %cst_62 [1] : vector<8x8xf32> to vector<8xf32>
    %133 = vector.shape_cast %132 : vector<8xf32> to vector<8x1xf32>
    %134 = tpu.reciprocal %133 {approx = true} : vector<8x1xf32> -> vector<8x1xf32>
    %135 = vector.broadcast %134 : vector<8x1xf32> to vector<8x8xf32>
    %136 = arith.mulf %131, %135 : vector<8x8xf32>
    %cst_63 = arith.constant dense<0.000000e+00> : vector<8x32xf32>
    %137 = tpu.matmul %136, %125, %cst_63 {dimension_numbers = #tpu.dot_dimension_numbers<[1], [0], [0], [1], [0, 0, 1, 1], [], []>} : vector<8x8xf32>, vector<8x32xf32>, vector<8x32xf32> -> vector<8x32xf32>
    %138 = vector.extract_strided_slice %104 {offsets = [32, 0], sizes = [32, 128], strides = [1, 1]} : vector<128x128xbf16> to vector<32x128xbf16>
    %cst_64 = arith.constant dense<0.000000e+00> : vector<8x128xf32>
    %139 = tpu.matmul %137, %138, %cst_64 {dimension_numbers = #tpu.dot_dimension_numbers<[1], [0], [0], [1], [0, 0, 1, 1], [], []>} : vector<8x32xf32>, vector<32x128xbf16>, vector<8x128xf32> -> vector<8x128xf32>
    %140 = arith.addf %122, %139 : vector<8x128xf32>
    %141 = vector.extract_strided_slice %93 {offsets = [0, 64], sizes = [8, 32], strides = [1, 1]} : vector<8x128xf32> to vector<8x32xf32>
    %142 = vector.extract_strided_slice %98 {offsets = [0, 64], sizes = [8, 32], strides = [1, 1]} : vector<8x128xf32> to vector<8x32xf32>
    %143 = vector.extract_strided_slice %103 {offsets = [0, 64], sizes = [8, 32], strides = [1, 1]} : vector<8x128xf32> to vector<8x32xf32>
    %cst_65 = arith.constant dense<0.000000e+00> : vector<8x8xf32>
    %144 = tpu.matmul %141, %142, %cst_65 {dimension_numbers = #tpu.dot_dimension_numbers<[1], [1], [0], [0], [0, 0, 1, 0], [], []>} : vector<8x32xf32>, vector<8x32xf32>, vector<8x8xf32> -> vector<8x8xf32>
    %cst_66 = arith.constant dense<0xFF800000> : vector<8xf32>
    %145 = vector.multi_reduction <maximumf>, %144, %cst_66 [1] : vector<8x8xf32> to vector<8xf32>
    %146 = vector.shape_cast %145 : vector<8xf32> to vector<8x1xf32>
    %147 = vector.broadcast %146 : vector<8x1xf32> to vector<8x8xf32>
    %148 = arith.subf %144, %147 : vector<8x8xf32>
    %149 = math.exp %148 : vector<8x8xf32>
    %cst_67 = arith.constant dense<0.000000e+00> : vector<8xf32>
    %150 = vector.multi_reduction <add>, %149, %cst_67 [1] : vector<8x8xf32> to vector<8xf32>
    %151 = vector.shape_cast %150 : vector<8xf32> to vector<8x1xf32>
    %152 = tpu.reciprocal %151 {approx = true} : vector<8x1xf32> -> vector<8x1xf32>
    %153 = vector.broadcast %152 : vector<8x1xf32> to vector<8x8xf32>
    %154 = arith.mulf %149, %153 : vector<8x8xf32>
    %cst_68 = arith.constant dense<0.000000e+00> : vector<8x32xf32>
    %155 = tpu.matmul %154, %143, %cst_68 {dimension_numbers = #tpu.dot_dimension_numbers<[1], [0], [0], [1], [0, 0, 1, 1], [], []>} : vector<8x8xf32>, vector<8x32xf32>, vector<8x32xf32> -> vector<8x32xf32>
    %156 = vector.extract_strided_slice %104 {offsets = [64, 0], sizes = [32, 128], strides = [1, 1]} : vector<128x128xbf16> to vector<32x128xbf16>
    %cst_69 = arith.constant dense<0.000000e+00> : vector<8x128xf32>
    %157 = tpu.matmul %155, %156, %cst_69 {dimension_numbers = #tpu.dot_dimension_numbers<[1], [0], [0], [1], [0, 0, 1, 1], [], []>} : vector<8x32xf32>, vector<32x128xbf16>, vector<8x128xf32> -> vector<8x128xf32>
    %158 = arith.addf %140, %157 : vector<8x128xf32>
    %159 = vector.extract_strided_slice %93 {offsets = [0, 96], sizes = [8, 32], strides = [1, 1]} : vector<8x128xf32> to vector<8x32xf32>
    %160 = vector.extract_strided_slice %98 {offsets = [0, 96], sizes = [8, 32], strides = [1, 1]} : vector<8x128xf32> to vector<8x32xf32>
    %161 = vector.extract_strided_slice %103 {offsets = [0, 96], sizes = [8, 32], strides = [1, 1]} : vector<8x128xf32> to vector<8x32xf32>
    %cst_70 = arith.constant dense<0.000000e+00> : vector<8x8xf32>
    %162 = tpu.matmul %159, %160, %cst_70 {dimension_numbers = #tpu.dot_dimension_numbers<[1], [1], [0], [0], [0, 0, 1, 0], [], []>} : vector<8x32xf32>, vector<8x32xf32>, vector<8x8xf32> -> vector<8x8xf32>
    %cst_71 = arith.constant dense<0xFF800000> : vector<8xf32>
    %163 = vector.multi_reduction <maximumf>, %162, %cst_71 [1] : vector<8x8xf32> to vector<8xf32>
    %164 = vector.shape_cast %163 : vector<8xf32> to vector<8x1xf32>
    %165 = vector.broadcast %164 : vector<8x1xf32> to vector<8x8xf32>
    %166 = arith.subf %162, %165 : vector<8x8xf32>
    %167 = math.exp %166 : vector<8x8xf32>
    %cst_72 = arith.constant dense<0.000000e+00> : vector<8xf32>
    %168 = vector.multi_reduction <add>, %167, %cst_72 [1] : vector<8x8xf32> to vector<8xf32>
    %169 = vector.shape_cast %168 : vector<8xf32> to vector<8x1xf32>
    %170 = tpu.reciprocal %169 {approx = true} : vector<8x1xf32> -> vector<8x1xf32>
    %171 = vector.broadcast %170 : vector<8x1xf32> to vector<8x8xf32>
    %172 = arith.mulf %167, %171 : vector<8x8xf32>
    %cst_73 = arith.constant dense<0.000000e+00> : vector<8x32xf32>
    %173 = tpu.matmul %172, %161, %cst_73 {dimension_numbers = #tpu.dot_dimension_numbers<[1], [0], [0], [1], [0, 0, 1, 1], [], []>} : vector<8x8xf32>, vector<8x32xf32>, vector<8x32xf32> -> vector<8x32xf32>
    %174 = vector.extract_strided_slice %104 {offsets = [96, 0], sizes = [32, 128], strides = [1, 1]} : vector<128x128xbf16> to vector<32x128xbf16>
    %cst_74 = arith.constant dense<0.000000e+00> : vector<8x128xf32>
    %175 = tpu.matmul %173, %174, %cst_74 {dimension_numbers = #tpu.dot_dimension_numbers<[1], [0], [0], [1], [0, 0, 1, 1], [], []>} : vector<8x32xf32>, vector<32x128xbf16>, vector<8x128xf32> -> vector<8x128xf32>
    %176 = arith.addf %158, %175 : vector<8x128xf32>
    %177 = vector.broadcast %105 : vector<1x128xf32> to vector<8x128xf32>
    %178 = arith.addf %176, %177 : vector<8x128xf32>
    %179 = arith.addf %178, %1 : vector<8x128xf32>
    %cst_75 = arith.constant dense<0.000000e+00> : vector<8xf32>
    %180 = vector.multi_reduction <add>, %179, %cst_75 [1] : vector<8x128xf32> to vector<8xf32>
    %181 = vector.shape_cast %180 : vector<8xf32> to vector<8x1xf32>
    %cst_76 = arith.constant 1.280000e+02 : f32
    %182 = vector.broadcast %cst_76 : f32 to vector<8x1xf32>
    %183 = arith.divf %181, %182 : vector<8x1xf32>
    %184 = vector.broadcast %183 : vector<8x1xf32> to vector<8x128xf32>
    %185 = arith.subf %179, %184 : vector<8x128xf32>
    %186 = arith.mulf %185, %185 : vector<8x128xf32>
    %cst_77 = arith.constant dense<0.000000e+00> : vector<8xf32>
    %187 = vector.multi_reduction <add>, %186, %cst_77 [1] : vector<8x128xf32> to vector<8xf32>
    %188 = vector.shape_cast %187 : vector<8xf32> to vector<8x1xf32>
    %cst_78 = arith.constant 1.280000e+02 : f32
    %189 = vector.broadcast %cst_78 : f32 to vector<8x1xf32>
    %190 = arith.divf %188, %189 : vector<8x1xf32>
    %cst_79 = arith.constant 9.99999974E-6 : f32
    %191 = vector.broadcast %cst_79 : f32 to vector<8x1xf32>
    %192 = arith.addf %190, %191 : vector<8x1xf32>
    %193 = math.rsqrt %192 : vector<8x1xf32>
    %194 = vector.broadcast %193 : vector<8x1xf32> to vector<8x128xf32>
    %195 = arith.mulf %185, %194 : vector<8x128xf32>
    %c0_80 = arith.constant 0 : index
    %c0_81 = arith.constant 0 : index
    %196 = vector.load %arg16[%c0_80, %c0_81] : memref<1x128xf32, #tpu.memory_space<vmem>>, vector<1x128xf32>
    %197 = vector.broadcast %196 : vector<1x128xf32> to vector<8x128xf32>
    %198 = arith.mulf %195, %197 : vector<8x128xf32>
    %c0_82 = arith.constant 0 : index
    %c0_83 = arith.constant 0 : index
    %199 = vector.load %arg17[%c0_82, %c0_83] : memref<1x128xf32, #tpu.memory_space<vmem>>, vector<1x128xf32>
    %200 = vector.broadcast %199 : vector<1x128xf32> to vector<8x128xf32>
    %201 = arith.addf %198, %200 : vector<8x128xf32>
    %c0_84 = arith.constant 0 : index
    %c0_85 = arith.constant 0 : index
    %c0_86 = arith.constant 0 : index
    %202 = vector.load %arg18[%c0_84, %c0_85, %c0_86] : memref<1x8x128xf32, #tpu.memory_space<vmem>>, vector<1x8x128xf32>
    %203 = vector.shape_cast %202 : vector<1x8x128xf32> to vector<8x128xf32>
    %204 = vector.shape_cast %201 : vector<8x128xf32> to vector<1x8x128xf32>
    tpu.vector_store %arg18[%c0_84, %c0_85, %c0_86], %204 {strides = array<i32>} : memref<1x8x128xf32, #tpu.memory_space<vmem>>, vector<1x8x128xf32>,
    return
  }
  func.func @transform_0(%arg0: i32) -> (i32, i32, i32) {
    %c0_i32 = arith.constant 0 : i32
    %c0_i32_0 = arith.constant 0 : i32
    %c0_i32_1 = arith.constant 0 : i32
    return %arg0, %c0_i32, %c0_i32_0 : i32, i32, i32
  }
  func.func @transform_1(%arg0: i32) -> (i32, i32, i32) {
    %c0_i32 = arith.constant 0 : i32
    %c0_i32_0 = arith.constant 0 : i32
    %c0_i32_1 = arith.constant 0 : i32
    return %arg0, %c0_i32, %c0_i32_0 : i32, i32, i32
  }
  func.func @transform_2(%arg0: i32) -> (i32, i32, i32) {
    %c0_i32 = arith.constant 0 : i32
    %c0_i32_0 = arith.constant 0 : i32
    %c0_i32_1 = arith.constant 0 : i32
    return %arg0, %c0_i32, %c0_i32_0 : i32, i32, i32
  }
  func.func @transform_3(%arg0: i32) -> (i32, i32) {
    %c0_i32 = arith.constant 0 : i32
    %c0_i32_0 = arith.constant 0 : i32
    %c0_i32_1 = arith.constant 0 : i32
    return %c0_i32, %c0_i32_0 : i32, i32
  }
  func.func @transform_4(%arg0: i32) -> (i32, i32) {
    %c0_i32 = arith.constant 0 : i32
    %c0_i32_0 = arith.constant 0 : i32
    %c0_i32_1 = arith.constant 0 : i32
    return %c0_i32, %c0_i32_0 : i32, i32
  }
  func.func @transform_5(%arg0: i32) -> (i32, i32) {
    %c0_i32 = arith.constant 0 : i32
    %c0_i32_0 = arith.constant 0 : i32
    %c0_i32_1 = arith.constant 0 : i32
    return %c0_i32, %c0_i32_0 : i32, i32
  }
  func.func @transform_6(%arg0: i32) -> (i32, i32) {
    %c0_i32 = arith.constant 0 : i32
    %c0_i32_0 = arith.constant 0 : i32
    %c0_i32_1 = arith.constant 0 : i32
    return %c0_i32, %c0_i32_0 : i32, i32
  }
  func.func @transform_7(%arg0: i32) -> (i32, i32) {
    %c0_i32 = arith.constant 0 : i32
    %c0_i32_0 = arith.constant 0 : i32
    %c0_i32_1 = arith.constant 0 : i32
    return %c0_i32, %c0_i32_0 : i32, i32
  }
  func.func @transform_8(%arg0: i32) -> (i32, i32) {
    %c0_i32 = arith.constant 0 : i32
    %c0_i32_0 = arith.constant 0 : i32
    %c0_i32_1 = arith.constant 0 : i32
    return %c0_i32, %c0_i32_0 : i32, i32
  }
  func.func @transform_9(%arg0: i32) -> (i32, i32) {
    %c0_i32 = arith.constant 0 : i32
    %c0_i32_0 = arith.constant 0 : i32
    %c0_i32_1 = arith.constant 0 : i32
    return %c0_i32, %c0_i32_0 : i32, i32
  }
  func.func @transform_10(%arg0: i32) -> (i32, i32) {
    %c0_i32 = arith.constant 0 : i32
    %c0_i32_0 = arith.constant 0 : i32
    %c0_i32_1 = arith.constant 0 : i32
    return %c0_i32, %c0_i32_0 : i32, i32
  }
  func.func @transform_11(%arg0: i32) -> (i32, i32) {
    %c0_i32 = arith.constant 0 : i32
    %c0_i32_0 = arith.constant 0 : i32
    %c0_i32_1 = arith.constant 0 : i32
    return %c0_i32, %c0_i32_0 : i32, i32
  }
  func.func @transform_12(%arg0: i32) -> (i32, i32) {
    %c0_i32 = arith.constant 0 : i32
    %c0_i32_0 = arith.constant 0 : i32
    %c0_i32_1 = arith.constant 0 : i32
    return %c0_i32, %c0_i32_0 : i32, i32
  }
  func.func @transform_13(%arg0: i32) -> (i32, i32) {
    %c0_i32 = arith.constant 0 : i32
    %c0_i32_0 = arith.constant 0 : i32
    %c0_i32_1 = arith.constant 0 : i32
    return %c0_i32, %c0_i32_0 : i32, i32
  }
  func.func @transform_14(%arg0: i32) -> (i32, i32) {
    %c0_i32 = arith.constant 0 : i32
    %c0_i32_0 = arith.constant 0 : i32
    %c0_i32_1 = arith.constant 0 : i32
    return %c0_i32, %c0_i32_0 : i32, i32
  }
  func.func @transform_15(%arg0: i32) -> (i32, i32) {
    %c0_i32 = arith.constant 0 : i32
    %c0_i32_0 = arith.constant 0 : i32
    %c0_i32_1 = arith.constant 0 : i32
    return %c0_i32, %c0_i32_0 : i32, i32
  }
  func.func @transform_16(%arg0: i32) -> (i32, i32) {
    %c0_i32 = arith.constant 0 : i32
    %c0_i32_0 = arith.constant 0 : i32
    %c0_i32_1 = arith.constant 0 : i32
    return %c0_i32, %c0_i32_0 : i32, i32
  }
  func.func @transform_17(%arg0: i32) -> (i32, i32, i32) {
    %c0_i32 = arith.constant 0 : i32
    %c0_i32_0 = arith.constant 0 : i32
    %c0_i32_1 = arith.constant 0 : i32
    return %arg0, %c0_i32, %c0_i32_0 : i32, i32, i32
  }
}

</mosaic_0001>

<bundles_post_ra>
// kernel: cognitive_attention_pallas.1
= control target key start
LH: loop header
LB: loop body
LE: loop exit
PB: predicated region body
PF: predicated region fallthrough
CT: control target
= control target key end

     0   :  { %s4196_s0 = inlined_call_operand.hbm [shape: f32[1,8,128], index: 0, kind: input, shape index: {}]   ;;  %s4197_s1 = inlined_call_operand.hbm [shape: f32[1,8,128], index: 1, kind: input, shape index: {}]   ;;  %s4198_s2 = inlined_call_operand.hbm [shape: f32[1,8,128], index: 2, kind: input, shape index: {}]   ;;  %s4199_s3 = inlined_call_operand.hbm [shape: bf16[128,384], index: 3, kind: input, shape index: {}]   ;;  %s4200_s4 = inlined_call_operand.hbm [shape: f32[1,384], index: 4, kind: input, shape index: {}]   ;;  %s4201_s5 = inlined_call_operand.hbm [shape: bf16[128,128], index: 5, kind: input, shape index: {}]   ;;  %s4202_s6 = inlined_call_operand.hbm [shape: f32[1,128], index: 6, kind: input, shape index: {}]   ;;  %s4203_s7 = inlined_call_operand.vmem [shape: bf16[128,128], index: 7, kind: input, shape index: {}]   ;;  %s4204_s8 = inlined_call_operand.hbm [shape: f32[1,128], index: 8, kind: input, shape index: {}]   ;;  %s4205_s9 = inlined_call_operand.hbm [shape: bf16[128,128], index: 9, kind: input, shape index: {}]   ;;  %s4206_s10 = inlined_call_operand.hbm [shape: f32[1,128], index: 10, kind: input, shape index: {}]   ;;  %s4207_s11 = inlined_call_operand.hbm [shape: bf16[128,128], index: 11, kind: input, shape index: {}]   ;;  %s4208_s12 = inlined_call_operand.hbm [shape: f32[1,128], index: 12, kind: input, shape index: {}]   ;;  %s4209_s13 = inlined_call_operand.hbm [shape: bf16[128,128], index: 13, kind: input, shape index: {}]   ;;  %s4210_s14 = inlined_call_operand.hbm [shape: f32[1,128], index: 14, kind: input, shape index: {}]   ;;  %s4211_s15 = inlined_call_operand.hbm [shape: f32[1,128], index: 15, kind: input, shape index: {}]   ;;  %s4212_s16 = inlined_call_operand.hbm [shape: f32[1,128], index: 16, kind: input, shape index: {}]   ;;  %s4213_s17 = inlined_call_operand.hbm [shape: f32[1,8,128], index: 17, kind: output, shape index: {}]  }
   0x1   :  { %4216 = sst [smem:[#allocation39_spill]] %s4196_s0 }
   0x2   :  { %4217 = sst [smem:[#allocation40_spill]] %s4197_s1 }
   0x3   :  { %22 = vsyncpa [#allocation3], 0 }
   0x4   :  { %23 = vsyncpa [#allocation6], 0 }
   0x5   :  { %24 = vsyncpa [#allocation9], 0 }
   0x6   :  { %25 = vsyncpa [#allocation12], 0 }
   0x7   :  { %26 = vsyncpa [#allocation15], 0 }
   0x8   :  { %27 = vsyncpa [#allocation18], 0 }
   0x9   :  { %28 = vsyncpa [#allocation21], 0 }
   0xa   :  { %29 = vsyncpa [#allocation24], 0 }
   0xb   :  { %30 = vsyncpa [#allocation27], 0 }
   0xc   :  { %31 = vsyncpa [#allocation4], 0  ;;  %s3612_s24 = smov [#allocation5]   ;;  %s3613_s26 = smov [#allocation8]  }
   0xd   :  { %s48_s25 = sshll.u32 %s3612_s24, 4  ;;  %s67_s27 = sshll.u32 %s3613_s26, 4  ;;  %s49_s25 = int_to_ptr.vmem [resolvable:$true] %s48_s25  ;;  %s3727_s27 = int_to_ptr.vmem [resolvable:$true] %s67_s27 }
   0xe   :  { %s4218_s0 = sld [smem:[#allocation40_spill]] }
  0x14   :  { %s3218_s30 = scalar_lea.hbm %s4218_s0, 128 }
  0x15   :  { %p3219_p0 = scmp.ne.s32.totalorder %s4218_s0, %s3218_s30  ;;  %p3222_p1 = scmp.lt.u32.totalorder %s3218_s30, %s4218_s0 }
  0x17   :  { %p3224_p2 = pnand %p3222_p1, %p3219_p0 }
  0x19   :  { %3227 = shalt.err (!%p3224_p2)
}
  0x1a   :  { %s3228_s21 = scalar_lea.vmem %s49_s25, 128  ;;  %p3233_p4 = scmp.lt.s32.totalorder %s49_s25, %s49_s25 }
  0x1b   :  { %p3229_p3 = scmp.ne.s32.totalorder %s49_s25, %s3228_s21  ;;  %p3234_p5 = scmp.lt.s32.totalorder %s3228_s21, %s3228_s21 }
  0x1d   :  { %p3235_p6 = por %p3234_p5, %p3233_p4 }
  0x1f   :  { %p3236_p7 = pnand %p3235_p6, %p3229_p3 }
  0x21   :  { %3239 = shalt.err (!%p3236_p7)
}
  0x22   :  { %51 = dma.hbm_to_vmem [thread:$0]  %s4218_s0, 128, %s49_s25, [#allocation6]  }
  0x23   :  { %s3240_s28 = scalar_lea.hbm %s4199_s3, 3072 }
  0x24   :  { %p3241_p8 = scmp.ne.s32.totalorder %s4199_s3, %s3240_s28  ;;  %p3244_p9 = scmp.lt.u32.totalorder %s3240_s28, %s4199_s3 }
  0x26   :  { %p3246_p10 = pnand %p3244_p9, %p3241_p8 }
  0x28   :  { %3249 = shalt.err (!%p3246_p10)
}
  0x29   :  { %s3250_s1 = scalar_lea.vmem %s3727_s27, 3072  ;;  %p3255_p12 = scmp.lt.s32.totalorder %s3727_s27, %s3727_s27 }
  0x2a   :  { %p3251_p11 = scmp.ne.s32.totalorder %s3727_s27, %s3250_s1  ;;  %p3256_p13 = scmp.lt.s32.totalorder %s3250_s1, %s3250_s1 }
  0x2c   :  { %p3257_p0 = por %p3256_p13, %p3255_p12 }
  0x2e   :  { %p3258_p1 = pnand %p3257_p0, %p3251_p11 }
  0x30   :  { %3261 = shalt.err (!%p3258_p1)
}
  0x31   :  { %s3614_s25 = smov 192   ;;  %s3615_s0 = smov 12  }
  0x32   :  { %73 = dma.hbm_to_vmem [thread:$0]  %s4199_s3, 3072, %s3727_s27, [#allocation9], %s3614_s25, %s3614_s25, %s3615_s0  }
  0x33   :  { %s3616_s22 = smov [#allocation11]   ;;  %s3262_s28 = scalar_lea.hbm %s4201_s5, 1024 }
  0x34   :  { %s89_s23 = sshll.u32 %s3616_s22, 4  ;;  %p3263_p2 = scmp.ne.s32.totalorder %s4201_s5, %s3262_s28  ;;  %s90_s23 = int_to_ptr.vmem [resolvable:$true] %s89_s23 }
  0x35   :  { %p3266_p3 = scmp.lt.u32.totalorder %s3262_s28, %s4201_s5 }
  0x37   :  { %p3268_p4 = pnand %p3266_p3, %p3263_p2 }
  0x39   :  { %3271 = shalt.err (!%p3268_p4)
}
  0x3a   :  { %s3272_s1 = scalar_lea.vmem %s90_s23, 1024  ;;  %p3277_p6 = scmp.lt.s32.totalorder %s90_s23, %s90_s23 }
  0x3b   :  { %p3273_p5 = scmp.ne.s32.totalorder %s90_s23, %s3272_s1  ;;  %p3278_p7 = scmp.lt.s32.totalorder %s3272_s1, %s3272_s1 }
  0x3d   :  { %p3279_p8 = por %p3278_p7, %p3277_p6 }
  0x3f   :  { %p3280_p9 = pnand %p3279_p8, %p3273_p5 }
  0x41   :  { %3283 = shalt.err (!%p3280_p9)
}
  0x42   :  { %s3617_s3 = smov 64   ;;  %s3618_s27 = smov 4  }
  0x43   :  { %95 = dma.hbm_to_vmem [thread:$0]  %s4201_s5, 1024, %s90_s23, [#allocation12], %s3617_s3, %s3617_s3, %s3618_s27  }
  0x44   :  { %s3619_s20 = smov [#allocation14]   ;;  %s3620_s22 = smov [#allocation17]  }
  0x45   :  { %s114_s21 = sshll.u32 %s3619_s20, 4  ;;  %s136_s24 = sshll.u32 %s3620_s22, 4  ;;  %s115_s21 = int_to_ptr.vmem [resolvable:$true] %s114_s21  ;;  %s137_s24 = int_to_ptr.vmem [resolvable:$true] %s136_s24 }
  0x46   :  { %s3284_s29 = scalar_lea.hbm %s4204_s8, 16 }
  0x47   :  { %p3285_p10 = scmp.ne.s32.totalorder %s4204_s8, %s3284_s29  ;;  %p3288_p11 = scmp.lt.u32.totalorder %s3284_s29, %s4204_s8 }
  0x49   :  { %p3290_p12 = pnand %p3288_p11, %p3285_p10 }
  0x4b   :  { %3293 = shalt.err (!%p3290_p12)
}
  0x4c   :  { %s3294_s5 = scalar_lea.vmem %s115_s21, 16  ;;  %s3298_s23 = scalar_lea.vmem %s115_s21, 32 }
  0x4d   :  { %p3295_p13 = scmp.ne.s32.totalorder %s115_s21, %s3294_s5  ;;  %p3299_p0 = scmp.lt.s32.totalorder %s115_s21, %s115_s21 }
  0x4e   :  { %p3300_p1 = scmp.lt.s32.totalorder %s3298_s23, %s3294_s5 }
  0x50   :  { %p3301_p2 = por %p3300_p1, %p3299_p0 }
  0x52   :  { %p3302_p3 = pnand %p3301_p2, %p3295_p13 }
  0x54   :  { %3305 = shalt.err (!%p3302_p3)
}
  0x55   :  { %117 = dma.hbm_to_vmem [thread:$0]  %s4204_s8, 16, %s115_s21, [#allocation15]  }
  0x56   :  { %s3306_s26 = scalar_lea.hbm %s4206_s10, 16 }
  0x57   :  { %p3307_p4 = scmp.ne.s32.totalorder %s4206_s10, %s3306_s26  ;;  %p3310_p5 = scmp.lt.u32.totalorder %s3306_s26, %s4206_s10 }
  0x59   :  { %p3312_p6 = pnand %p3310_p5, %p3307_p4 }
  0x5b   :  { %3315 = shalt.err (!%p3312_p6)
}
  0x5c   :  { %s3316_s19 = scalar_lea.vmem %s137_s24, 16  ;;  %s3320_s1 = scalar_lea.vmem %s137_s24, 32 }
  0x5d   :  { %p3317_p7 = scmp.ne.s32.totalorder %s137_s24, %s3316_s19  ;;  %p3321_p8 = scmp.lt.s32.totalorder %s137_s24, %s137_s24 }
  0x5e   :  { %p3322_p9 = scmp.lt.s32.totalorder %s3320_s1, %s3316_s19 }
  0x60   :  { %p3323_p10 = por %p3322_p9, %p3321_p8 }
  0x62   :  { %p3324_p11 = pnand %p3323_p10, %p3317_p7 }
  0x64   :  { %3327 = shalt.err (!%p3324_p11)
}
  0x65   :  { %139 = dma.hbm_to_vmem [thread:$0]  %s4206_s10, 16, %s137_s24, [#allocation18]  }
  0x66   :  { %s3621_s5 = smov [#allocation20]   ;;  %s3622_s25 = smov [#allocation23]  }
  0x67   :  { %s158_s23 = sshll.u32 %s3621_s5, 4  ;;  %s180_s0 = sshll.u32 %s3622_s25, 4  ;;  %s159_s23 = int_to_ptr.vmem [resolvable:$true] %s158_s23  ;;  %s181_s0 = int_to_ptr.vmem [resolvable:$true] %s180_s0 }
  0x68   :  { %s3328_s26 = scalar_lea.hbm %s4208_s12, 16 }
  0x69   :  { %p3329_p12 = scmp.ne.s32.totalorder %s4208_s12, %s3328_s26  ;;  %p3332_p13 = scmp.lt.u32.totalorder %s3328_s26, %s4208_s12 }
  0x6b   :  { %p3334_p0 = pnand %p3332_p13, %p3329_p12 }
  0x6d   :  { %3337 = shalt.err (!%p3334_p0)
}
  0x6e   :  { %s3338_s10 = scalar_lea.vmem %s159_s23, 16  ;;  %s3342_s24 = scalar_lea.vmem %s159_s23, 32 }
  0x6f   :  { %p3339_p1 = scmp.ne.s32.totalorder %s159_s23, %s3338_s10  ;;  %p3343_p2 = scmp.lt.s32.totalorder %s159_s23, %s159_s23 }
  0x70   :  { %p3344_p3 = scmp.lt.s32.totalorder %s3342_s24, %s3338_s10 }
  0x72   :  { %p3345_p4 = por %p3344_p3, %p3343_p2 }
  0x74   :  { %p3346_p5 = pnand %p3345_p4, %p3339_p1 }
  0x76   :  { %3349 = shalt.err (!%p3346_p5)
}
  0x77   :  { %161 = dma.hbm_to_vmem [thread:$0]  %s4208_s12, 16, %s159_s23, [#allocation21]  }
  0x78   :  { %s3350_s5 = scalar_lea.hbm %s4210_s14, 16 }
  0x79   :  { %p3351_p6 = scmp.ne.s32.totalorder %s4210_s14, %s3350_s5  ;;  %p3354_p7 = scmp.lt.u32.totalorder %s3350_s5, %s4210_s14 }
  0x7b   :  { %p3356_p8 = pnand %p3354_p7, %p3351_p6 }
  0x7d   :  { %3359 = shalt.err (!%p3356_p8)
}
  0x7e   :  { %s3360_s28 = scalar_lea.vmem %s181_s0, 16  ;;  %s3364_s29 = scalar_lea.vmem %s181_s0, 32 }
  0x7f   :  { %p3361_p9 = scmp.ne.s32.totalorder %s181_s0, %s3360_s28  ;;  %p3365_p10 = scmp.lt.s32.totalorder %s181_s0, %s181_s0 }
  0x80   :  { %p3366_p11 = scmp.lt.s32.totalorder %s3364_s29, %s3360_s28 }
  0x82   :  { %p3367_p12 = por %p3366_p11, %p3365_p10 }
  0x84   :  { %p3368_p13 = pnand %p3367_p12, %p3361_p9 }
  0x86   :  { %3371 = shalt.err (!%p3368_p13)
}
  0x87   :  { %183 = dma.hbm_to_vmem [thread:$0]  %s4210_s14, 16, %s181_s0, [#allocation24]  }
  0x88   :  { %s3623_s18 = smov [#allocation2]   ;;  %s3624_s10 = smov [#allocation7]  }
  0x89   :  { %s38_s30 = sshll.u32 %s3623_s18, 4  ;;  %s58_s24 = sshll.u32 %s3624_s10, 4  ;;  %s39_s30 = int_to_ptr.vmem [resolvable:$true] %s38_s30  ;;  %s59_s24 = int_to_ptr.vmem [resolvable:$true] %s58_s24 }
  0x8a   :  { %s4219_s8 = sld [smem:[#allocation39_spill]] }
  0x90   :  { %s3372_s21 = scalar_lea.hbm %s4219_s8, 128 }
  0x91   :  { %p3373_p0 = scmp.ne.s32.totalorder %s4219_s8, %s3372_s21  ;;  %p3376_p1 = scmp.lt.u32.totalorder %s3372_s21, %s4219_s8 }
  0x93   :  { %p3378_p2 = pnand %p3376_p1, %p3373_p0 }
  0x95   :  { %3381 = shalt.err (!%p3378_p2)
}
  0x96   :  { %s3382_s14 = scalar_lea.vmem %s39_s30, 128  ;;  %p3387_p4 = scmp.lt.s32.totalorder %s39_s30, %s39_s30 }
  0x97   :  { %p3383_p3 = scmp.ne.s32.totalorder %s39_s30, %s3382_s14  ;;  %p3388_p5 = scmp.lt.s32.totalorder %s3382_s14, %s3382_s14 }
  0x99   :  { %p3389_p6 = por %p3388_p5, %p3387_p4 }
  0x9b   :  { %p3390_p7 = pnand %p3389_p6, %p3383_p3 }
  0x9d   :  { %3393 = shalt.err (!%p3390_p7)
}
  0x9e   :  { %41 = dma.hbm_to_vmem [thread:$0]  %s4219_s8, 128, %s39_s30, [#allocation3]  }
  0x9f   :  { %s3394_s12 = scalar_lea.hbm %s4198_s2, 128 }
  0xa0   :  { %p3395_p8 = scmp.ne.s32.totalorder %s4198_s2, %s3394_s12  ;;  %p3398_p9 = scmp.lt.u32.totalorder %s3394_s12, %s4198_s2 }
  0xa2   :  { %p3400_p10 = pnand %p3398_p9, %p3395_p8 }
  0xa4   :  { %3403 = shalt.err (!%p3400_p10)
}
  0xa5   :  { %s3404_s1 = scalar_lea.vmem %s59_s24, 128  ;;  %p3409_p12 = scmp.lt.s32.totalorder %s59_s24, %s59_s24 }
  0xa6   :  { %p3405_p11 = scmp.ne.s32.totalorder %s59_s24, %s3404_s1  ;;  %p3410_p13 = scmp.lt.s32.totalorder %s3404_s1, %s3404_s1 }
  0xa8   :  { %p3411_p0 = por %p3410_p13, %p3409_p12 }
  0xaa   :  { %p3412_p1 = pnand %p3411_p0, %p3405_p11 }
  0xac   :  { %3415 = shalt.err (!%p3412_p1)
}
  0xad   :  { %61 = dma.hbm_to_vmem [thread:$0]  %s4198_s2, 128, %s59_s24, [#allocation6]  }
  0xae   :  { %s3625_s21 = smov [#allocation10]   ;;  %s3626_s25 = smov [#allocation13]  }
  0xaf   :  { %s80_s5 = sshll.u32 %s3625_s21, 4  ;;  %s102_s20 = sshll.u32 %s3626_s25, 4  ;;  %s81_s5 = int_to_ptr.vmem [resolvable:$true] %s80_s5  ;;  %s103_s20 = int_to_ptr.vmem [resolvable:$true] %s102_s20 }
  0xb0   :  { %s3416_s0 = scalar_lea.hbm %s4200_s4, 48 }
  0xb1   :  { %p3417_p2 = scmp.ne.s32.totalorder %s4200_s4, %s3416_s0  ;;  %p3420_p3 = scmp.lt.u32.totalorder %s3416_s0, %s4200_s4 }
  0xb3   :  { %p3422_p4 = pnand %p3420_p3, %p3417_p2 }
  0xb5   :  { %3425 = shalt.err (!%p3422_p4)
}
  0xb6   :  { %s3426_s2 = scalar_lea.vmem %s81_s5, 48  ;;  %s3430_s24 = scalar_lea.vmem %s81_s5, 64 }
  0xb7   :  { %p3427_p5 = scmp.ne.s32.totalorder %s81_s5, %s3426_s2  ;;  %p3431_p6 = scmp.lt.s32.totalorder %s81_s5, %s81_s5 }
  0xb8   :  { %p3432_p7 = scmp.lt.s32.totalorder %s3430_s24, %s3426_s2 }
  0xba   :  { %p3433_p8 = por %p3432_p7, %p3431_p6 }
  0xbc   :  { %p3434_p9 = pnand %p3433_p8, %p3427_p5 }
  0xbe   :  { %3437 = shalt.err (!%p3434_p9)
}
  0xbf   :  { %83 = dma.hbm_to_vmem [thread:$0]  %s4200_s4, 48, %s81_s5, [#allocation9]  }
  0xc0   :  { %s3438_s1 = scalar_lea.hbm %s4202_s6, 16 }
  0xc1   :  { %p3439_p10 = scmp.ne.s32.totalorder %s4202_s6, %s3438_s1  ;;  %p3442_p11 = scmp.lt.u32.totalorder %s3438_s1, %s4202_s6 }
  0xc3   :  { %p3444_p12 = pnand %p3442_p11, %p3439_p10 }
  0xc5   :  { %3447 = shalt.err (!%p3444_p12)
}
  0xc6   :  { %s3448_s22 = scalar_lea.vmem %s103_s20, 16  ;;  %s3452_s14 = scalar_lea.vmem %s103_s20, 32 }
  0xc7   :  { %p3449_p13 = scmp.ne.s32.totalorder %s103_s20, %s3448_s22  ;;  %p3453_p0 = scmp.lt.s32.totalorder %s103_s20, %s103_s20 }
  0xc8   :  { %p3454_p1 = scmp.lt.s32.totalorder %s3452_s14, %s3448_s22 }
  0xca   :  { %p3455_p2 = por %p3454_p1, %p3453_p0 }
  0xcc   :  { %p3456_p3 = pnand %p3455_p2, %p3449_p13 }
  0xce   :  { %3459 = shalt.err (!%p3456_p3)
}
  0xcf   :  { %105 = dma.hbm_to_vmem [thread:$0]  %s4202_s6, 16, %s103_s20, [#allocation12]  }
  0xd0   :  { %s3627_s0 = smov [#allocation16]   ;;  %s3628_s28 = smov [#allocation19]  }
  0xd1   :  { %s123_s26 = sshll.u32 %s3627_s0, 4  ;;  %s145_s29 = sshll.u32 %s3628_s28, 4  ;;  %s124_s26 = int_to_ptr.vmem [resolvable:$true] %s123_s26  ;;  %s146_s29 = int_to_ptr.vmem [resolvable:$true] %s145_s29 }
  0xd2   :  { %s3460_s24 = scalar_lea.hbm %s4205_s9, 1024 }
  0xd3   :  { %p3461_p4 = scmp.ne.s32.totalorder %s4205_s9, %s3460_s24  ;;  %p3464_p5 = scmp.lt.u32.totalorder %s3460_s24, %s4205_s9 }
  0xd5   :  { %p3466_p6 = pnand %p3464_p5, %p3461_p4 }
  0xd7   :  { %3469 = shalt.err (!%p3466_p6)
}
  0xd8   :  { %s3470_s6 = scalar_lea.vmem %s124_s26, 1024  ;;  %p3475_p8 = scmp.lt.s32.totalorder %s124_s26, %s124_s26 }
  0xd9   :  { %p3471_p7 = scmp.ne.s32.totalorder %s124_s26, %s3470_s6  ;;  %p3476_p9 = scmp.lt.s32.totalorder %s3470_s6, %s3470_s6 }
  0xdb   :  { %p3477_p10 = por %p3476_p9, %p3475_p8 }
  0xdd   :  { %p3478_p11 = pnand %p3477_p10, %p3471_p7 }
  0xdf   :  { %3481 = shalt.err (!%p3478_p11)
}
  0xe0   :  { %129 = dma.hbm_to_vmem [thread:$0]  %s4205_s9, 1024, %s124_s26, [#allocation15], %s3617_s3, %s3617_s3, %s3618_s27  }
  0xe1   :  { %s3482_s21 = scalar_lea.hbm %s4207_s11, 1024 }
  0xe2   :  { %p3483_p12 = scmp.ne.s32.totalorder %s4207_s11, %s3482_s21  ;;  %p3486_p13 = scmp.lt.u32.totalorder %s3482_s21, %s4207_s11 }
  0xe4   :  { %p3488_p0 = pnand %p3486_p13, %p3483_p12 }
  0xe6   :  { %3491 = shalt.err (!%p3488_p0)
}
  0xe7   :  { %s3492_s5 = scalar_lea.vmem %s146_s29, 1024  ;;  %p3497_p2 = scmp.lt.s32.totalorder %s146_s29, %s146_s29 }
  0xe8   :  { %p3493_p1 = scmp.ne.s32.totalorder %s146_s29, %s3492_s5  ;;  %p3498_p3 = scmp.lt.s32.totalorder %s3492_s5, %s3492_s5 }
  0xea   :  { %p3499_p4 = por %p3498_p3, %p3497_p2 }
  0xec   :  { %p3500_p5 = pnand %p3499_p4, %p3493_p1 }
  0xee   :  { %3503 = shalt.err (!%p3500_p5)
}
  0xef   :  { %151 = dma.hbm_to_vmem [thread:$0]  %s4207_s11, 1024, %s146_s29, [#allocation18], %s3617_s3, %s3617_s3, %s3618_s27  }
  0xf0   :  { %s3629_s26 = smov [#allocation22]   ;;  %s3630_s12 = smov [#allocation25]  }
  0xf1   :  { %s167_s28 = sshll.u32 %s3629_s26, 4  ;;  %s190_s2 = sshll.u32 %s3630_s12, 4  ;;  %s168_s28 = int_to_ptr.vmem [resolvable:$true] %s167_s28  ;;  %s191_s2 = int_to_ptr.vmem [resolvable:$true] %s190_s2 }
  0xf2   :  { %s3504_s18 = scalar_lea.hbm %s4209_s13, 1024 }
  0xf3   :  { %p3505_p6 = scmp.ne.s32.totalorder %s4209_s13, %s3504_s18  ;;  %p3508_p7 = scmp.lt.u32.totalorder %s3504_s18, %s4209_s13 }
  0xf5   :  { %p3510_p8 = pnand %p3508_p7, %p3505_p6 }
  0xf7   :  { %3513 = shalt.err (!%p3510_p8)
}
  0xf8   :  { %s3514_s11 = scalar_lea.vmem %s168_s28, 1024  ;;  %p3519_p10 = scmp.lt.s32.totalorder %s168_s28, %s168_s28 }
  0xf9   :  { %p3515_p9 = scmp.ne.s32.totalorder %s168_s28, %s3514_s11  ;;  %p3520_p11 = scmp.lt.s32.totalorder %s3514_s11, %s3514_s11 }
  0xfb   :  { %p3521_p12 = por %p3520_p11, %p3519_p10 }
  0xfd   :  { %p3522_p13 = pnand %p3521_p12, %p3515_p9 }
  0xff   :  { %3525 = shalt.err (!%p3522_p13)
}
 0x100   :  { %173 = dma.hbm_to_vmem [thread:$0]  %s4209_s13, 1024, %s168_s28, [#allocation21], %s3617_s3, %s3617_s3, %s3618_s27  }
 0x101   :  { %s3526_s21 = scalar_lea.hbm %s4211_s15, 16 }
 0x102   :  { %p3527_p0 = scmp.ne.s32.totalorder %s4211_s15, %s3526_s21  ;;  %p3530_p1 = scmp.lt.u32.totalorder %s3526_s21, %s4211_s15 }
 0x104   :  { %p3532_p2 = pnand %p3530_p1, %p3527_p0 }
 0x106   :  { %3535 = shalt.err (!%p3532_p2)
}
 0x107   :  { %s3536_s5 = scalar_lea.vmem %s191_s2, 16  ;;  %s3540_s9 = scalar_lea.vmem %s191_s2, 32 }
 0x108   :  { %p3537_p3 = scmp.ne.s32.totalorder %s191_s2, %s3536_s5  ;;  %p3541_p4 = scmp.lt.s32.totalorder %s191_s2, %s191_s2 }
 0x109   :  { %p3542_p5 = scmp.lt.s32.totalorder %s3540_s9, %s3536_s5 }
 0x10b   :  { %p3543_p6 = por %p3542_p5, %p3541_p4 }
 0x10d   :  { %p3544_p7 = pnand %p3543_p6, %p3537_p3 }
 0x10f   :  { %3547 = shalt.err (!%p3544_p7)
}
 0x110   :  { %193 = dma.hbm_to_vmem [thread:$0]  %s4211_s15, 16, %s191_s2, [#allocation24]  }
 0x111   :  { %s3631_s0 = smov [#allocation26]   ;;  %s3548_s24 = scalar_lea.hbm %s4212_s16, 16 }
 0x112   :  { %s200_s26 = sshll.u32 %s3631_s0, 4  ;;  %p3549_p8 = scmp.ne.s32.totalorder %s4212_s16, %s3548_s24  ;;  %s201_s26 = int_to_ptr.vmem [resolvable:$true] %s200_s26 }
 0x113   :  { %p3552_p9 = scmp.lt.u32.totalorder %s3548_s24, %s4212_s16 }
 0x115   :  { %p3554_p10 = pnand %p3552_p9, %p3549_p8 }
 0x117   :  { %3557 = shalt.err (!%p3554_p10)
}
 0x118   :  { %s3558_s6 = scalar_lea.vmem %s201_s26, 16  ;;  %s3562_s15 = scalar_lea.vmem %s201_s26, 32 }
 0x119   :  { %p3559_p11 = scmp.ne.s32.totalorder %s201_s26, %s3558_s6  ;;  %p3563_p12 = scmp.lt.s32.totalorder %s201_s26, %s201_s26 }
 0x11a   :  { %p3564_p13 = scmp.lt.s32.totalorder %s3562_s15, %s3558_s6 }
 0x11c   :  { %p3565_p0 = por %p3564_p13, %p3563_p12 }
 0x11e   :  { %p3566_p1 = pnand %p3565_p0, %p3559_p11 }
 0x120   :  { %3569 = shalt.err (!%p3566_p1)
}
 0x121   :  { %203 = dma.hbm_to_vmem [thread:$0]  %s4212_s16, 16, %s201_s26, [#allocation27]  }
 0x122   :  { %3592 = dma.done.wait [#allocation3], 128  }
 0x123   :  { %3593 = vsyncadd [#allocation3], 4294967168 }
 0x124   :  { %3594 = dma.done.wait [#allocation6], 256  }
 0x125   :  { %3595 = vsyncadd [#allocation6], 4294967040 }
 0x126   :  { %3596 = dma.done.wait [#allocation9], 3120  }
 0x127   :  { %3597 = vsyncadd [#allocation9], 4294964176 }
 0x128   :  { %3598 = dma.done.wait [#allocation12], 1040  }
 0x129   :  { %3599 = vsyncadd [#allocation12], 4294966256 }
 0x12a   :  { %3600 = dma.done.wait [#allocation15], 1040  }
 0x12b   :  { %3601 = vsyncadd [#allocation15], 4294966256 }
 0x12c   :  { %3602 = dma.done.wait [#allocation18], 1040  }
 0x12d   :  { %3603 = vsyncadd [#allocation18], 4294966256 }
 0x12e   :  { %3604 = dma.done.wait [#allocation21], 1040  }
 0x12f   :  { %3605 = vsyncadd [#allocation21], 4294966256 }
 0x130   :  { %3606 = dma.done.wait [#allocation24], 32  }
 0x131   :  { %3607 = vsyncadd [#allocation24], 4294967264 }
 0x132   :  { %3608 = dma.done.wait [#allocation27], 16  }
 0x133   :  { %3609 = vsyncadd [#allocation27], 4294967280  ;;  %v3632_v0 = vmov 0.0   ;;  %v3112_v1 = vld [vmem:[#allocation8 + $0x4] ss:$12 sps:$4 sm:$0xff]   ;;  %v3944_v23 = vld [vmem:[#allocation2] sm:$0xff]  ;;  %v290_v26 = vlaneseq }
 0x134   :  { %465 = vmatprep.mubr.f32.mxu0 %v3632_v0  ;;  %2875 = vmatprep.subr.bf16.mxu1 %v3632_v0  ;;  %v3114_v2 = vld [vmem:[#allocation8] ss:$12 sps:$4 sm:$0xff]   ;;  %v3115_v3 = vld [vmem:[#allocation8 + $0x1c] ss:$12 sps:$4 sm:$0xff]   ;;  %v3117_v4 = vld [vmem:[#allocation8 + $0x18] ss:$12 sps:$4 sm:$0xff]  }
 0x135   :  { %433 = vmatprep.subr.bf16.mxu0 %v3112_v1  ;;  %v3118_v5 = vld [vmem:[#allocation8 + $0x34] ss:$12 sps:$4 sm:$0xff]   ;;  %v3120_v6 = vld [vmem:[#allocation8 + $0x30] ss:$12 sps:$4 sm:$0xff]   ;;  %v3121_v7 = vld [vmem:[#allocation8 + $0x4c] ss:$12 sps:$4 sm:$0xff]  }
 0x136   :  { %434 = vmatpush1.bf16.msra.mxu0 %v3114_v2  ;;  %v3123_v8 = vld [vmem:[#allocation8 + $0x48] ss:$12 sps:$4 sm:$0xff]   ;;  %v3124_v10 = vld [vmem:[#allocation8 + $0x64] ss:$12 sps:$4 sm:$0xff]   ;;  %v3137_v11 = vld [vmem:[#allocation8 + $0x20] ss:$12 sps:$4 sm:$0xff]  }
 0x137   :  { %435 = vmatprep.subr.bf16.mxu0 %v3115_v3  ;;  %v3136_v9 = vld [vmem:[#allocation8 + $0x8] ss:$12 sps:$4 sm:$0xff]   ;;  %v3126_v12 = vld [vmem:[#allocation8 + $0x60] ss:$12 sps:$4 sm:$0xff]   ;;  %v3129_v14 = vld [vmem:[#allocation8 + $0x78] ss:$12 sps:$4 sm:$0xff]  }
 0x138   :  { %2876 = vmatpush3.bf16.msra.mxu1 %v3136_v9  ;;  %v3127_v13 = vld [vmem:[#allocation8 + $0x7c] ss:$12 sps:$4 sm:$0xff]   ;;  %v3138_v15 = vld [vmem:[#allocation8 + $0x38] ss:$12 sps:$4 sm:$0xff]   ;;  %v3130_v16 = vld [vmem:[#allocation8 + $0x94] ss:$12 sps:$4 sm:$0xff]  }
 0x139   :  { %2877 = vmatprep.subr.bf16.mxu1 %v3632_v0  ;;  %v3139_v17 = vld [vmem:[#allocation8 + $0x50] ss:$12 sps:$4 sm:$0xff]   ;;  %v3133_v19 = vld [vmem:[#allocation8 + $0xac] ss:$12 sps:$4 sm:$0xff]   ;;  %v3140_v20 = vld [vmem:[#allocation8 + $0x68] ss:$12 sps:$4 sm:$0xff]  }
 0x13a   :  { %436 = vmatpush1.bf16.msra.mxu0 %v3117_v4  ;;  %v3132_v18 = vld [vmem:[#allocation8 + $0x90] ss:$12 sps:$4 sm:$0xff]   ;;  %v3135_v21 = vld [vmem:[#allocation8 + $0xa8] ss:$12 sps:$4 sm:$0xff]   ;;  %v3141_v22 = vld [vmem:[#allocation8 + $0x80] ss:$12 sps:$4 sm:$0xff]  }
 0x13b   :  { %437 = vmatprep.subr.bf16.mxu0 %v3118_v5  ;;  %v3142_v24 = vld [vmem:[#allocation8 + $0x98] ss:$12 sps:$4 sm:$0xff]   ;;  %v3143_v25 = vld [vmem:[#allocation8 + $0xb0] ss:$12 sps:$4 sm:$0xff]   ;;  %vm3633_vm0 = vmmov 0   ;;  %v291_v27 = vshrl.u32 %v290_v26, 7 }
 0x13c   :  { %2878 = vmatpush3.bf16.msra.mxu1 %v3137_v11  ;;  %2891 = vmatprep.mubr.msk.f32.mxu1 %vm3633_vm0, %v3632_v0  ;;  %v288_v29 = vld [vmem:[#allocation10] sm:$0x7]  ;;  %vm527_vm1 = vcmask 261120   ;;  %s3634_s16 = smov 96   ;;  %vm604_vm2 = vcmask 64512   ;;  %s3635_s11 = smov 32  }
 0x13d   :  { %2879 = vmatprep.subr.bf16.mxu1 %v3632_v0  ;;  %v296_v28 = vsub.s32 1, %v291_v27  ;;  %v292_v30 = vsub.s32 0, %v291_v27  ;;  %v300_v37 = vsub.s32 2, %v291_v27  ;;  %v3146_v63 = vld [vmem:[#allocation11 + $0x10] sm:$0xff]   ;;  %v3147_v1 = vld [vmem:[#allocation11 + $0x18] sm:$0xff]   ;;  %v3144_v5 = vld [vmem:[#allocation11] sm:$0xff]  }
 0x13e   :  { %438 = vmatpush1.bf16.msra.mxu0 %v3120_v6 }
 0x13f   :  { %439 = vmatprep.subr.bf16.mxu0 %v3121_v7  ;;  %v297_v31 = vrot.slane %v288_v29, %v296_v28  ;;  %v293_v33 = vrot.slane %v288_v29, %v292_v30  ;;  %v301_v38 = vrot.slane %v288_v29, %v300_v37  ;;  %v3145_v7 = vld [vmem:[#allocation11 + $0x8] sm:$0xff]   ;;  %v3148_v29 = vld [vmem:[#allocation11 + $0x20] sm:$0xff]  }
 0x140   :  { %2880 = vmatpush3.bf16.msra.mxu1 %v3138_v15  ;;  %v3149_v30 = vld [vmem:[#allocation11 + $0x28] sm:$0xff]  }
 0x141   :  { %2881 = vmatprep.subr.bf16.mxu1 %v3632_v0 }
 0x142   :  { %440 = vmatpush1.bf16.msra.mxu0 %v3123_v8 }
 0x143   :  { %441 = vmatprep.subr.bf16.mxu0 %v3124_v10 }
 0x144   :  { %2882 = vmatpush3.bf16.msra.mxu1 %v3139_v17 }
 0x145   :  { %2883 = vmatprep.subr.bf16.mxu1 %v3632_v0 }
 0x146   :  { %442 = vmatpush1.bf16.msra.mxu0 %v3126_v12 }
 0x147   :  { %443 = vmatprep.subr.bf16.mxu0 %v3127_v13 }
 0x148   :  { %2884 = vmatpush3.bf16.msra.mxu1 %v3140_v20 }
 0x149   :  { %2885 = vmatprep.subr.bf16.mxu1 %v3632_v0 }
 0x14a   :  { %444 = vmatpush1.bf16.msra.mxu0 %v3129_v14 }
 0x14b   :  { %445 = vmatprep.subr.bf16.mxu0 %v3130_v16 }
 0x14c   :  { %2886 = vmatpush3.bf16.msra.mxu1 %v3141_v22 }
 0x14d   :  { %2887 = vmatprep.subr.bf16.mxu1 %v3632_v0 }
 0x14e   :  { %446 = vmatpush1.bf16.msra.mxu0 %v3132_v18 }
 0x14f   :  { %447 = vmatprep.subr.bf16.mxu0 %v3133_v19 }
 0x150   :  { %2888 = vmatpush3.bf16.msra.mxu1 %v3142_v24 }
 0x151   :  { %2889 = vmatprep.subr.bf16.mxu1 %v3632_v0 }
 0x152   :  { %448 = vmatpush1.bf16.msra.mxu0 %v3135_v21 }
 0x153   :  { %2904 = vmatprep.subr.mxu0 %v3632_v0 }
 0x154   :  { %2890 = vmatpush3.bf16.msra.mxu1 %v3143_v25 }
 0x155   :  { %466 = vmatmul.mubr.f32.vlgmr.msra.gmra.mrb[0].mxu0 %v3944_v23  ;;  %2894 = vmatprep.subr.mxu1 %v3632_v0 }
 0x156   :  { %2906 = vmatprep.mubr.msk.f32.mxu0 %vm3633_vm0, %v3632_v0 }
 0x157   :  { %2892 = vmatmul.mubr.f32.vlgmr.msra.gmra.mrb[0].mxu1 %v3944_v23 }
 0x158   :  { %2896 = vmatprep.mubr.msk.f32.mxu1 %vm3633_vm0, %v3632_v0 }
 0x228   :  { %v467_v32 = vpop.f32.mrb[0].mxu0 }
 0x229   :  { %v469_v34 = vpop.f32.mrb[1].mxu0  ;;  %v3961_v36 = vadd.f32 %v467_v32, %v293_v33 }
 0x22a   :  { %v470_v35 = vadd.f32 %v469_v34, %v297_v31  ;;  %v506_v39 = vpop.f32.mrb[0].mxu1 }
 0x22b   :  { %v3970_v40 = vadd.f32 %v506_v39, %v301_v38  ;;  %v2893_v41 = vpop.f32.mrb[1].mxu1 }
 0x22c   :  { %691 = vrot.lane.b32.xlu0 %v470_v35, %s3634_s16  ;;  %2895 = vmatpush3.xpose.msk.msra.mxu1 %vm527_vm1, %v470_v35 }
 0x22d   :  { %2899 = vmatprep.subr.mxu1 %v3632_v0 }
 0x22f   :  { %2897 = vmatmul.mubr.msk.f32.vlgmr.msra.gmra.mrb[2].mxu1 %vm527_vm1, %v3961_v36 }
 0x230   :  { %689 = vrot.lane.b32.xlu0 %v3961_v36, %s3634_s16  ;;  %2901 = vmatprep.mubr.msk.f32.mxu1 %vm3633_vm0, %v3632_v0 }
 0x231   :  { %2900 = vmatpush3.msra.mxu1 %v3970_v40 }
 0x232   :  { %2909 = vmatprep.subr.mxu1 %v3632_v0 }
 0x29e   :  { %v692_v42 = vpop.permute.xlu0 %691 }
 0x29f   :  { %2905 = vmatpush3.xpose.msk.msra.mxu0 %vm527_vm1, %v692_v42 }
 0x2a0   :  { %2914 = vmatprep.subr.bf16.mxu0 %v3632_v0 }
 0x2a2   :  { %v690_v43 = vpop.permute.xlu0 %689 }
 0x2a3   :  { %2907 = vmatmul.mubr.msk.f32.vlgmr.msra.gmra.mrb[2].mxu0 %vm527_vm1, %v690_v43 }
 0x2a4   :  { %2918 = vmatprep.mubr.msk.f32.mxu0 %vm3633_vm0, %v3632_v0  ;;  %2915 = vmatpush3.bf16.msra.mxu0 %v3146_v63 }
 0x2a5   :  { %2916 = vmatprep.subr.bf16.mxu0 %v3632_v0 }
 0x2a8   :  { %2917 = vmatpush3.bf16.msra.mxu0 %v3147_v1 }
 0x2a9   :  { %2928 = vmatprep.subr.mxu0 %v3632_v0 }
 0x302   :  { %v600_v44 = vpop.f32.mrb[2].mxu1 }
 0x303   :  { %v2898_v45 = vpop.f32.mrb[3].mxu1  ;;  %v605_v46 = vsel %vm604_vm2, %v600_v44, -inf }
 0x304   :  { %606 = vmax.xlane.f32.xlu1 %v605_v46 }
 0x376   :  { %v763_v47 = vpop.f32.mrb[2].mxu0 }
 0x377   :  { %v2908_v48 = vpop.f32.mrb[3].mxu0  ;;  %v767_v49 = vsel %vm604_vm2, %v763_v47, -inf }
 0x378   :  { %768 = vmax.xlane.f32.xlu1 %v767_v49  ;;  %v3151_v48 = vld [vmem:[#allocation11 + $0x38] sm:$0xff]  }
 0x391   :  { %v607_v50 = vpop.xlane.xlu1 %606 }
 0x392   :  { %v608_v51 = vsub.f32 %v600_v44, %v607_v50 }
 0x394   :  { %v609_v52 = vmul.f32 1.442695, %v608_v51 }
 0x396   :  { %3184 = vpow2.f32 %v609_v52 }
 0x3a0   :  { %v3185_v53 = vpop.eup %3184 }
 0x3a1   :  { %v611_v54 = vsel %vm604_vm2, %v3185_v53, 0.0 }
 0x3a2   :  { %612 = vadd.xlane.f32.xlu0 %v611_v54 }
 0x3b8   :  { %1050 = vrot.lane.b32.xlu0 %v3970_v40, %s3617_s3 }
 0x3bc   :  { %1182 = vrot.lane.b32.xlu0 %v470_v35, %s3635_s11 }
 0x405   :  { %v769_v55 = vpop.xlane.xlu1 %768 }
 0x406   :  { %v770_v56 = vsub.f32 %v763_v47, %v769_v55  ;;  %v3150_v47 = vld [vmem:[#allocation11 + $0x30] sm:$0xff]   ;;  %v3154_v55 = vld [vmem:[%s4203_s7] sm:$0xff]  }
 0x408   :  { %v771_v57 = vmul.f32 1.442695, %v770_v56  ;;  %v3156_v56 = vld [vmem:[%s4203_s7 + $0x8] sm:$0xff]  }
 0x40a   :  { %3186 = vpow2.f32 %v771_v57  ;;  %v3158_v57 = vld [vmem:[%s4203_s7 + $0x10] sm:$0xff]  }
 0x414   :  { %v3187_v58 = vpop.eup %3186 }
 0x415   :  { %v773_v59 = vsel %vm604_vm2, %v3187_v58, 0.0 }
 0x416   :  { %774 = vadd.xlane.f32.xlu1 %v773_v59  ;;  %v3162_v59 = vld [vmem:[%s4203_s7 + $0x20] sm:$0xff]  }
 0x427   :  { %779 = vrot.lane.b32.xlu1 %v3970_v40, %s3634_s16 }
 0x42b   :  { %963 = vrot.lane.b32.xlu1 %v470_v35, %s3617_s3 }
 0x42f   :  { %v613_v60 = vpop.xlane.xlu0 %612  ;;  %961 = vrot.lane.b32.xlu1 %v3961_v36, %s3617_s3 }
 0x430   :  { %3188 = vrcp.f32 %v613_v60  ;;  %v3164_v60 = vld [vmem:[%s4203_s7 + $0x28] sm:$0xff]  }
 0x433   :  { %v1051_v9 = vpop.permute.xlu0 %1050 }
 0x437   :  { %v1183_v31 = vpop.permute.xlu0 %1182 }
 0x43a   :  { %v3189_v61 = vpop.eup %3188 }
 0x43b   :  { %v615_v62 = vmul.f32 %v3189_v61, %v3185_v53  ;;  %v3166_v61 = vld [vmem:[%s4203_s7 + $0x30] sm:$0xff]  }
 0x43d   :  { %2902 = vmatmul.mubr.msk.f32.vlgmr.msra.gmra.mrb[4].mxu1 %vm604_vm2, %v615_v62  ;;  %v3152_v62 = vld [vmem:[#allocation16] sm:$0xff]  }
 0x43e   :  { %2911 = vmatprep.mubr.msk.f32.mxu1 %vm3633_vm0, %v3632_v0 }
 0x4a3   :  { %v775_v2 = vpop.xlane.xlu1 %774 }
 0x4a4   :  { %3190 = vrcp.f32 %v775_v2  ;;  %v3153_v2 = vld [vmem:[#allocation16 + $0x8] sm:$0xff]  }
 0x4a7   :  { %v780_v3 = vpop.permute.xlu1 %779 }
 0x4a8   :  { %2910 = vmatpush3.msra.mxu1 %v780_v3  ;;  %v3155_v3 = vld [vmem:[#allocation16 + $0x10] sm:$0xff]  }
 0x4a9   :  { %2921 = vmatprep.subr.bf16.mxu1 %v3632_v0 }
 0x4ab   :  { %v964_v11 = vpop.permute.xlu1 %963 }
 0x4ae   :  { %v3191_v4 = vpop.eup %3190 }
 0x4af   :  { %v777_v6 = vmul.f32 %v3191_v4, %v3187_v58  ;;  %v962_v14 = vpop.permute.xlu1 %961  ;;  %v3160_v58 = vld [vmem:[%s4203_s7 + $0x18] sm:$0xff]  }
 0x4b0   :  { %v3157_v4 = vld [vmem:[#allocation16 + $0x18] sm:$0xff]  }
 0x4b1   :  { %2912 = vmatmul.mubr.msk.f32.vlgmr.msra.gmra.mrb[6].mxu1 %vm604_vm2, %v777_v6  ;;  %v3161_v6 = vld [vmem:[#allocation16 + $0x28] sm:$0xff]  }
 0x4b2   :  { %2922 = vmatpush3.bf16.msra.mxu1 %v3144_v5  ;;  %2925 = vmatprep.mubr.msk.f32.mxu1 %vm3633_vm0, %v3632_v0  ;;  %v3159_v5 = vld [vmem:[#allocation16 + $0x20] sm:$0xff]  }
 0x4b3   :  { %2923 = vmatprep.subr.bf16.mxu1 %v3632_v0 }
 0x4b6   :  { %2924 = vmatpush3.bf16.msra.mxu1 %v3145_v7  ;;  %v3163_v7 = vld [vmem:[#allocation16 + $0x30] sm:$0xff]  }
 0x4b7   :  { %2933 = vmatprep.subr.mxu1 %v3632_v0 }
 0x510   :  { %v685_v8 = vpop.f32.mrb[4].mxu1 }
 0x511   :  { %v2903_v10 = vpop.f32.mrb[5].mxu1  ;;  %2926 = vmatmul.mubr.msk.f32.vlgmr.msra.gmra.mrb[8].mxu1 %vm527_vm1, %v685_v8  ;;  %v3165_v8 = vld [vmem:[#allocation16 + $0x38] sm:$0xff]  }
 0x512   :  { %2934 = vmatpush3.msra.mxu1 %v1051_v9  ;;  %2935 = vmatprep.mubr.msk.f32.mxu1 %vm3633_vm0, %v3632_v0  ;;  %v254_v9 = vld [vmem:[#allocation5] sm:$0xff]  ;;  %v3167_v10 = vld [vmem:[%s4203_s7 + $0x38] sm:$0xff]   ;;  %s3636_s7 = smov [#allocation28]  }
 0x513   :  { %2945 = vmatprep.subr.mxu1 %v3632_v0 }
 0x584   :  { %v851_v12 = vpop.f32.mrb[6].mxu1 }
 0x585   :  { %v2913_v13 = vpop.f32.mrb[7].mxu1  ;;  %2919 = vmatmul.mubr.msk.f32.vlgmr.msra.gmra.mrb[4].mxu0 %vm527_vm1, %v851_v12 }
 0x586   :  { %2929 = vmatpush3.xpose.msk.msra.mxu0 %vm527_vm1, %v964_v11  ;;  %2930 = vmatprep.mubr.msk.f32.mxu0 %vm3633_vm0, %v3632_v0  ;;  %v2728_v11 = vld [vmem:[#allocation13] ss:$0 sm:$0xff] }
 0x587   :  { %2938 = vmatprep.subr.bf16.mxu0 %v3632_v0 }
 0x589   :  { %2931 = vmatmul.mubr.msk.f32.vlgmr.msra.gmra.mrb[6].mxu0 %vm527_vm1, %v962_v14 }
 0x58a   :  { %2942 = vmatprep.mubr.msk.f32.mxu0 %vm3633_vm0, %v3632_v0  ;;  %2939 = vmatpush3.bf16.msra.mxu0 %v3148_v29  ;;  %v255_v29 = vld [vmem:[#allocation7] sm:$0xff] }
 0x58b   :  { %2940 = vmatprep.subr.bf16.mxu0 %v3632_v0 }
 0x58e   :  { %2941 = vmatpush3.bf16.msra.mxu0 %v3149_v30 }
 0x58f   :  { %2955 = vmatprep.subr.bf16.mxu0 %v3632_v0 }
 0x5e4   :  { %v957_v15 = vpop.f32.mrb[8].mxu1 }
 0x5e5   :  { %v2927_v16 = vpop.f32.mrb[9].mxu1 }
 0x5e6   :  { %v2738_v16 = vld [vmem:[#allocation17] ss:$0 sm:$0xff] }
 0x658   :  { %v904_v17 = vpop.f32.mrb[4].mxu0 }
 0x659   :  { %v958_v18 = vadd.f32 %v957_v15, %v904_v17  ;;  %v2920_v19 = vpop.f32.mrb[5].mxu0 }
 0x65c   :  { %v1035_v20 = vpop.f32.mrb[6].mxu0 }
 0x65d   :  { %v2932_v21 = vpop.f32.mrb[7].mxu0  ;;  %v1039_v22 = vsel %vm604_vm2, %v1035_v20, -inf }
 0x65e   :  { %1040 = vmax.xlane.f32.xlu1 %v1039_v22  ;;  %v3169_v21 = vld [vmem:[#allocation19 + $0x8] sm:$0xff]   ;;  %v3170_v22 = vld [vmem:[#allocation19 + $0x10] sm:$0xff]  }
 0x6eb   :  { %v1041_v24 = vpop.xlane.xlu1 %1040 }
 0x6ec   :  { %v1042_v25 = vsub.f32 %v1035_v20, %v1041_v24  ;;  %v3168_v20 = vld [vmem:[#allocation19] sm:$0xff]   ;;  %v3171_v24 = vld [vmem:[#allocation19 + $0x18] sm:$0xff]  }
 0x6ee   :  { %v1043_v26 = vmul.f32 1.442695, %v1042_v25  ;;  %v3172_v25 = vld [vmem:[#allocation19 + $0x20] sm:$0xff]  }
 0x6f0   :  { %3192 = vpow2.f32 %v1043_v26  ;;  %v3173_v26 = vld [vmem:[#allocation19 + $0x28] sm:$0xff]  }
 0x6fa   :  { %v3193_v27 = vpop.eup %3192 }
 0x6fb   :  { %v1045_v28 = vsel %vm604_vm2, %v3193_v27, 0.0 }
 0x6fc   :  { %1046 = vadd.xlane.f32.xlu0 %v1045_v28  ;;  %v3175_v28 = vld [vmem:[#allocation19 + $0x38] sm:$0xff]  }
 0x712   :  { %1180 = vrot.lane.b32.xlu0 %v3961_v36, %s3635_s11 }
 0x789   :  { %v1047_v32 = vpop.xlane.xlu0 %1046 }
 0x78a   :  { %3194 = vrcp.f32 %v1047_v32 }
 0x78d   :  { %v1181_v35 = vpop.permute.xlu0 %1180 }
 0x794   :  { %v3195_v33 = vpop.eup %3194 }
 0x795   :  { %v1049_v34 = vmul.f32 %v3195_v33, %v3193_v27  ;;  %v3174_v27 = vld [vmem:[#allocation19 + $0x30] sm:$0xff]  }
 0x797   :  { %2936 = vmatmul.mubr.msk.f32.vlgmr.msra.gmra.mrb[10].mxu1 %vm604_vm2, %v1049_v34 }
 0x798   :  { %2946 = vmatpush3.xpose.msk.msra.mxu1 %vm527_vm1, %v1183_v31  ;;  %2947 = vmatprep.mubr.msk.f32.mxu1 %vm3633_vm0, %v3632_v0  ;;  %v2729_v31 = vld [vmem:[#allocation14] ss:$0 sm:$0xff] }
 0x799   :  { %2950 = vmatprep.subr.mxu1 %v3632_v0 }
 0x79b   :  { %2948 = vmatmul.mubr.msk.f32.vlgmr.msra.gmra.mrb[12].mxu1 %vm527_vm1, %v1181_v35 }
 0x79c   :  { %2952 = vmatprep.mubr.msk.f32.mxu1 %vm3633_vm0, %v3632_v0 }
 0x86a   :  { %v1122_v36 = vpop.f32.mrb[10].mxu1 }
 0x86b   :  { %v2937_v37 = vpop.f32.mrb[11].mxu1  ;;  %2943 = vmatmul.mubr.msk.f32.vlgmr.msra.gmra.mrb[8].mxu0 %vm527_vm1, %v1122_v36  ;;  %v2747_v36 = vld [vmem:[#allocation20] ss:$0 sm:$0xff] }
 0x86c   :  { %2959 = vmatprep.mubr.msk.f32.mxu0 %vm3633_vm0, %v3632_v0  ;;  %2956 = vmatpush3.bf16.msra.mxu0 %v3150_v47 }
 0x86d   :  { %2957 = vmatprep.subr.bf16.mxu0 %v3632_v0 }
 0x86e   :  { %v1254_v38 = vpop.f32.mrb[12].mxu1 }
 0x86f   :  { %v2949_v39 = vpop.f32.mrb[13].mxu1  ;;  %v1258_v41 = vsel %vm604_vm2, %v1254_v38, -inf }
 0x870   :  { %1259 = vmax.xlane.f32.xlu0 %v1258_v41  ;;  %2958 = vmatpush3.bf16.msra.mxu0 %v3151_v48 }
 0x871   :  { %2981 = vmatprep.subr.bf16.mxu0 %v3632_v0 }
 0x8fd   :  { %v1260_v42 = vpop.xlane.xlu0 %1259 }
 0x8fe   :  { %v1261_v43 = vsub.f32 %v1254_v38, %v1260_v42 }
 0x900   :  { %v1262_v44 = vmul.f32 1.442695, %v1261_v43 }
 0x902   :  { %3196 = vpow2.f32 %v1262_v44 }
 0x90c   :  { %v3197_v45 = vpop.eup %3196 }
 0x90d   :  { %v1264_v46 = vsel %vm604_vm2, %v3197_v45, 0.0 }
 0x90e   :  { %1265 = vadd.xlane.f32.xlu1 %v1264_v46 }
 0x91f   :  { %1269 = vrot.lane.b32.xlu1 %v3970_v40, %s3635_s11 }
 0x93e   :  { %v1175_v49 = vpop.f32.mrb[8].mxu0 }
 0x93f   :  { %v4037_v50 = vadd.f32 %v1175_v49, %v958_v18  ;;  %v2944_v51 = vpop.f32.mrb[9].mxu0 }
 0x99b   :  { %v1266_v52 = vpop.xlane.xlu1 %1265 }
 0x99c   :  { %3198 = vrcp.f32 %v1266_v52 }
 0x99f   :  { %v1270_v53 = vpop.permute.xlu1 %1269 }
 0x9a0   :  { %2951 = vmatpush3.msra.mxu1 %v1270_v53 }
 0x9a1   :  { %2962 = vmatprep.subr.bf16.mxu1 %v3632_v0 }
 0x9a6   :  { %v3199_v54 = vpop.eup %3198 }
 0x9a7   :  { %v1268_v40 = vmul.f32 %v3199_v54, %v3197_v45 }
 0x9a9   :  { %2953 = vmatmul.mubr.msk.f32.vlgmr.msra.gmra.mrb[14].mxu1 %vm604_vm2, %v1268_v40 }
 0x9aa   :  { %2978 = vmatprep.mubr.msk.f32.mxu1 %vm3633_vm0, %v3632_v0  ;;  %2963 = vmatpush3.bf16.msra.mxu1 %v3154_v55 }
 0x9ab   :  { %2964 = vmatprep.subr.bf16.mxu1 %v3632_v0 }
 0x9ae   :  { %2965 = vmatpush3.bf16.msra.mxu1 %v3156_v56 }
 0x9af   :  { %2966 = vmatprep.subr.bf16.mxu1 %v3632_v0 }
 0x9b2   :  { %2967 = vmatpush3.bf16.msra.mxu1 %v3158_v57 }
 0x9b3   :  { %2968 = vmatprep.subr.bf16.mxu1 %v3632_v0 }
 0x9b6   :  { %2969 = vmatpush3.bf16.msra.mxu1 %v3160_v58 }
 0x9b7   :  { %2970 = vmatprep.subr.bf16.mxu1 %v3632_v0 }
 0x9ba   :  { %2971 = vmatpush3.bf16.msra.mxu1 %v3162_v59 }
 0x9bb   :  { %2972 = vmatprep.subr.bf16.mxu1 %v3632_v0 }
 0x9be   :  { %2973 = vmatpush3.bf16.msra.mxu1 %v3164_v60 }
 0x9bf   :  { %2974 = vmatprep.subr.bf16.mxu1 %v3632_v0 }
 0x9c2   :  { %2975 = vmatpush3.bf16.msra.mxu1 %v3166_v61 }
 0x9c3   :  { %2976 = vmatprep.subr.bf16.mxu1 %v3632_v0 }
 0x9c6   :  { %2977 = vmatpush3.bf16.msra.mxu1 %v3167_v10 }
 0x9c7   :  { %3000 = vmatprep.subr.bf16.mxu1 %v3632_v0 }
 0xa7c   :  { %v1341_v63 = vpop.f32.mrb[14].mxu1 }
 0xa7d   :  { %v2954_v1 = vpop.f32.mrb[15].mxu1  ;;  %2960 = vmatmul.mubr.msk.f32.vlgmr.msra.gmra.mrb[10].mxu0 %vm527_vm1, %v1341_v63 }
 0xa7e   :  { %2982 = vmatpush3.bf16.msra.mxu0 %v3152_v62  ;;  %2997 = vmatprep.mubr.msk.f32.mxu0 %vm3633_vm0, %v3632_v0 }
 0xa7f   :  { %2983 = vmatprep.subr.bf16.mxu0 %v3632_v0 }
 0xa82   :  { %2984 = vmatpush3.bf16.msra.mxu0 %v3153_v2 }
 0xa83   :  { %2985 = vmatprep.subr.bf16.mxu0 %v3632_v0 }
 0xa86   :  { %2986 = vmatpush3.bf16.msra.mxu0 %v3155_v3 }
 0xa87   :  { %2987 = vmatprep.subr.bf16.mxu0 %v3632_v0 }
 0xa8a   :  { %2988 = vmatpush3.bf16.msra.mxu0 %v3157_v4 }
 0xa8b   :  { %2989 = vmatprep.subr.bf16.mxu0 %v3632_v0 }
 0xa8e   :  { %2990 = vmatpush3.bf16.msra.mxu0 %v3159_v5 }
 0xa8f   :  { %2991 = vmatprep.subr.bf16.mxu0 %v3632_v0 }
 0xa92   :  { %2992 = vmatpush3.bf16.msra.mxu0 %v3161_v6 }
 0xa93   :  { %2993 = vmatprep.subr.bf16.mxu0 %v3632_v0 }
 0xa96   :  { %2994 = vmatpush3.bf16.msra.mxu0 %v3163_v7 }
 0xa97   :  { %2995 = vmatprep.subr.bf16.mxu0 %v3632_v0 }
 0xa9a   :  { %2996 = vmatpush3.bf16.msra.mxu0 %v3165_v8 }
 0xa9b   :  { %3019 = vmatprep.subr.mxu0 %v3632_v0 }
 0xa9d   :  { %2998 = vmatmul.mubr.f32.vlgmr.msra.gmra.mrb[12].mxu0 %v254_v9 }
 0xa9e   :  { %3021 = vmatprep.mubr.msk.f32.mxu0 %vm3633_vm0, %v3632_v0 }
 0xb50   :  { %v1394_v12 = vpop.f32.mrb[10].mxu0 }
 0xb51   :  { %v1398_v13 = vadd.f32 %v1394_v12, %v4037_v50  ;;  %v2961_v14 = vpop.f32.mrb[11].mxu0 }
 0xb53   :  { %v1405_v15 = vadd.f32 %v2728_v11, %v1398_v13 }
 0xb55   :  { %2979 = vmatmul.mubr.f32.vlgmr.msra.gmra.mrb[16].mxu1 %v1405_v15 }
 0xb56   :  { %3016 = vmatprep.mubr.msk.f32.mxu1 %vm3633_vm0, %v3632_v0  ;;  %3001 = vmatpush3.bf16.msra.mxu1 %v3168_v20 }
 0xb57   :  { %3002 = vmatprep.subr.bf16.mxu1 %v3632_v0 }
 0xb5a   :  { %3003 = vmatpush3.bf16.msra.mxu1 %v3169_v21 }
 0xb5b   :  { %3004 = vmatprep.subr.bf16.mxu1 %v3632_v0 }
 0xb5e   :  { %3005 = vmatpush3.bf16.msra.mxu1 %v3170_v22 }
 0xb5f   :  { %3006 = vmatprep.subr.bf16.mxu1 %v3632_v0 }
 0xb62   :  { %3007 = vmatpush3.bf16.msra.mxu1 %v3171_v24 }
 0xb63   :  { %3008 = vmatprep.subr.bf16.mxu1 %v3632_v0 }
 0xb66   :  { %3009 = vmatpush3.bf16.msra.mxu1 %v3172_v25 }
 0xb67   :  { %3010 = vmatprep.subr.bf16.mxu1 %v3632_v0 }
 0xb6a   :  { %3011 = vmatpush3.bf16.msra.mxu1 %v3173_v26 }
 0xb6b   :  { %3012 = vmatprep.subr.bf16.mxu1 %v3632_v0 }
 0xb6e   :  { %3013 = vmatpush3.bf16.msra.mxu1 %v3174_v27 }
 0xb6f   :  { %3014 = vmatprep.subr.bf16.mxu1 %v3632_v0 }
 0xb70   :  { %v1620_v17 = vpop.f32.mrb[12].mxu0 }
 0xb71   :  { %v4091_v18 = vadd.f32 %v2738_v16, %v1620_v17  ;;  %v2999_v19 = vpop.f32.mrb[13].mxu0 }
 0xb72   :  { %3015 = vmatpush3.bf16.msra.mxu1 %v3175_v28 }
 0xb73   :  { %1912 = vrot.lane.b32.xlu0 %v4091_v18, %s3634_s16  ;;  %2184 = vrot.lane.b32.xlu1 %v4091_v18, %s3617_s3 }
 0xb74   :  { %3020 = vmatpush3.xpose.msk.msra.mxu0 %vm527_vm1, %v4091_v18  ;;  %3053 = vmatprep.subr.mxu1 %v3632_v0 }
 0xb75   :  { %3024 = vmatprep.subr.mxu0 %v3632_v0  ;;  %3017 = vmatmul.mubr.f32.vlgmr.msra.gmra.mrb[18].mxu1 %v255_v29  ;;  %v3176_v29 = vld [vmem:[#allocation22 + $0x10] sm:$0xff]  }
 0xb76   :  { %3055 = vmatprep.mubr.msk.f32.mxu1 %vm3633_vm0, %v3632_v0 }
 0xbe5   :  { %v2185_v30 = vpop.permute.xlu1 %2184  ;;  %v1913_v53 = vpop.permute.xlu0 %1912 }
 0xbe6   :  { %3054 = vmatpush3.xpose.msk.msra.mxu1 %vm527_vm1, %v2185_v30 }
 0xbe7   :  { %3058 = vmatprep.subr.mxu1 %v3632_v0 }
 0xc28   :  { %v1511_v32 = vpop.f32.mrb[16].mxu1 }
 0xc29   :  { %v1512_v33 = vadd.f32 %v2729_v31, %v1511_v32  ;;  %v2980_v34 = vpop.f32.mrb[17].mxu1  ;;  %v3177_v32 = vld [vmem:[#allocation22 + $0x18] sm:$0xff]  }
 0xc2b   :  { %2182 = vrot.lane.b32.xlu1 %v1512_v33, %s3617_s3  ;;  %3022 = vmatmul.mubr.msk.f32.vlgmr.msra.gmra.mrb[14].mxu0 %vm527_vm1, %v1512_v33 }
 0xc2c   :  { %3026 = vmatprep.mubr.msk.f32.mxu0 %vm3633_vm0, %v3632_v0 }
 0xc48   :  { %v1729_v37 = vpop.f32.mrb[18].mxu1 }
 0xc49   :  { %v4119_v38 = vadd.f32 %v2747_v36, %v1729_v37  ;;  %v3018_v39 = vpop.f32.mrb[19].mxu1 }
 0xc4a   :  { %v3180_v39 = vld [vmem:[#allocation22 + $0x20] sm:$0xff]  }
 0xc4b   :  { %3025 = vmatpush3.msra.mxu0 %v4119_v38 }
 0xc4c   :  { %3029 = vmatprep.subr.mxu0 %v3632_v0 }
 0xc9d   :  { %v2183_v35 = vpop.permute.xlu1 %2182 }
 0xc9e   :  { %3056 = vmatmul.mubr.msk.f32.vlgmr.msra.gmra.mrb[20].mxu1 %vm527_vm1, %v2183_v35  ;;  %v3178_v35 = vld [vmem:[#allocation22] sm:$0xff]  }
 0xc9f   :  { %3060 = vmatprep.mubr.msk.f32.mxu1 %vm3633_vm0, %v3632_v0 }
 0xcfe   :  { %v1822_v41 = vpop.f32.mrb[14].mxu0 }
 0xcff   :  { %v3023_v42 = vpop.f32.mrb[15].mxu0  ;;  %v1826_v43 = vsel %vm604_vm2, %v1822_v41, -inf }
 0xd00   :  { %1827 = vmax.xlane.f32.xlu1 %v1826_v43  ;;  %v3181_v43 = vld [vmem:[#allocation22 + $0x28] sm:$0xff]  }
 0xd11   :  { %2271 = vrot.lane.b32.xlu1 %v4119_v38, %s3617_s3  ;;  %s2663_s3 = sshll.u32 %s3636_s7, 4  ;;  %s2664_s3 = int_to_ptr.vmem [resolvable:$true] %s2663_s3 }
 0xd12   :  { %s3570_s12 = scalar_lea.vmem %s2664_s3, 128  ;;  %p3575_p3 = scmp.lt.s32.totalorder %s2664_s3, %s2664_s3 }
 0xd13   :  { %p3571_p2 = scmp.ne.s32.totalorder %s2664_s3, %s3570_s12  ;;  %p3576_p4 = scmp.lt.s32.totalorder %s3570_s12, %s3570_s12 }
 0xd15   :  { %p3577_p5 = por %p3576_p4, %p3575_p3 }
 0xd17   :  { %p3578_p6 = pnand %p3577_p5, %p3571_p2 }
 0xd71   :  { %v2256_v44 = vpop.f32.mrb[20].mxu1 }
 0xd72   :  { %v3057_v45 = vpop.f32.mrb[21].mxu1  ;;  %v2260_v46 = vsel %vm604_vm2, %v2256_v44, -inf }
 0xd73   :  { %2261 = vmax.xlane.f32.xlu0 %v2260_v46  ;;  %v3183_v45 = vld [vmem:[#allocation22 + $0x38] sm:$0xff]  }
 0xd89   :  { %1910 = vrot.lane.b32.xlu0 %v1512_v33, %s3634_s16 }
 0xd8d   :  { %v1828_v47 = vpop.xlane.xlu1 %1827 }
 0xd8e   :  { %v1829_v49 = vsub.f32 %v1822_v41, %v1828_v47 }
 0xd90   :  { %v1830_v50 = vmul.f32 1.442695, %v1829_v49 }
 0xd91   :  { %v2272_v48 = vpop.permute.xlu1 %2271 }
 0xd92   :  { %3059 = vmatpush3.msra.mxu1 %v2272_v48  ;;  %3200 = vpow2.f32 %v1830_v50 }
 0xd93   :  { %3070 = vmatprep.subr.mxu1 %v3632_v0 }
 0xd9c   :  { %v3201_v51 = vpop.eup %3200 }
 0xd9d   :  { %v1832_v52 = vsel %vm604_vm2, %v3201_v51, 0.0 }
 0xda8   :  { %1833 = vadd.xlane.f32.xlu0 %v1832_v52 }
 0xdbe   :  { %2403 = vrot.lane.b32.xlu0 %v4091_v18, %s3635_s11 }
 0xe00   :  { %v2262_v54 = vpop.xlane.xlu0 %2261 }
 0xe01   :  { %v2263_v40 = vsub.f32 %v2256_v44, %v2262_v54  ;;  %v3182_v44 = vld [vmem:[#allocation22 + $0x30] sm:$0xff]   ;;  %v2780_v54 = vld [vmem:[#allocation23] ss:$0 sm:$0xff] }
 0xe03   :  { %v2264_v55 = vmul.f32 1.442695, %v2263_v40 }
 0xe04   :  { %v1911_v58 = vpop.permute.xlu0 %1910 }
 0xe05   :  { %3202 = vpow2.f32 %v2264_v55 }
 0xe0f   :  { %v3203_v56 = vpop.eup %3202 }
 0xe10   :  { %v2266_v57 = vsel %vm604_vm2, %v3203_v56, 0.0 }
 0xe11   :  { %2267 = vadd.xlane.f32.xlu0 %v2266_v57 }
 0xe27   :  { %2401 = vrot.lane.b32.xlu0 %v1512_v33, %s3635_s11 }
 0xe35   :  { %v1834_v59 = vpop.xlane.xlu0 %1833 }
 0xe36   :  { %3204 = vrcp.f32 %v1834_v59 }
 0xe39   :  { %v2404_v62 = vpop.permute.xlu0 %2403 }
 0xe40   :  { %v3205_v60 = vpop.eup %3204 }
 0xe41   :  { %v1836_v61 = vmul.f32 %v3205_v60, %v3201_v51 }
 0xe43   :  { %3027 = vmatmul.mubr.msk.f32.vlgmr.msra.gmra.mrb[16].mxu0 %vm604_vm2, %v1836_v61 }
 0xe44   :  { %3030 = vmatpush3.xpose.msk.msra.mxu0 %vm527_vm1, %v1913_v53  ;;  %3031 = vmatprep.mubr.msk.f32.mxu0 %vm3633_vm0, %v3632_v0 }
 0xe45   :  { %3034 = vmatprep.subr.mxu0 %v3632_v0 }
 0xe47   :  { %3032 = vmatmul.mubr.msk.f32.vlgmr.msra.gmra.mrb[18].mxu0 %vm527_vm1, %v1911_v58 }
 0xe48   :  { %3036 = vmatprep.mubr.msk.f32.mxu0 %vm3633_vm0, %v3632_v0 }
 0xe9e   :  { %v2268_v63 = vpop.xlane.xlu0 %2267 }
 0xe9f   :  { %3206 = vrcp.f32 %v2268_v63 }
 0xea2   :  { %v2402_v3 = vpop.permute.xlu0 %2401 }
 0xea9   :  { %v3207_v1 = vpop.eup %3206 }
 0xeaa   :  { %v2270_v2 = vmul.f32 %v3207_v1, %v3203_v56 }
 0xeac   :  { %3061 = vmatmul.mubr.msk.f32.vlgmr.msra.gmra.mrb[22].mxu1 %vm604_vm2, %v2270_v2 }
 0xead   :  { %3071 = vmatpush3.xpose.msk.msra.mxu1 %vm527_vm1, %v2404_v62  ;;  %3072 = vmatprep.mubr.msk.f32.mxu1 %vm3633_vm0, %v3632_v0 }
 0xeae   :  { %3075 = vmatprep.subr.mxu1 %v3632_v0 }
 0xeb0   :  { %3073 = vmatmul.mubr.msk.f32.vlgmr.msra.gmra.mrb[24].mxu1 %vm527_vm1, %v2402_v3  ;;  %v2781_v3 = vld [vmem:[#allocation25] ss:$0 sm:$0xff] }
 0xeb1   :  { %3077 = vmatprep.mubr.msk.f32.mxu1 %vm3633_vm0, %v3632_v0 }
 0xf16   :  { %v1906_v4 = vpop.f32.mrb[16].mxu0 }
 0xf17   :  { %v3028_v5 = vpop.f32.mrb[17].mxu0 }
 0xf18   :  { %v2782_v5 = vld [vmem:[#allocation26] ss:$0 sm:$0xff] }
 0xf1a   :  { %v1984_v6 = vpop.f32.mrb[18].mxu0 }
 0xf1b   :  { %v3033_v7 = vpop.f32.mrb[19].mxu0  ;;  %v1988_v8 = vsel %vm604_vm2, %v1984_v6, -inf }
 0xf1c   :  { %1989 = vmax.xlane.f32.xlu0 %v1988_v8 }
 0xf7f   :  { %v4151_v9 = vpop.f32.mrb[22].mxu1 }
 0xf80   :  { %v3062_v10 = vpop.f32.mrb[23].mxu1 }
 0xf83   :  { %v2475_v11 = vpop.f32.mrb[24].mxu1 }
 0xf84   :  { %v3074_v12 = vpop.f32.mrb[25].mxu1  ;;  %v2479_v13 = vsel %vm604_vm2, %v2475_v11, -inf }
 0xf85   :  { %2480 = vmax.xlane.f32.xlu1 %v2479_v13 }
 0xf96   :  { %2490 = vrot.lane.b32.xlu1 %v4119_v38, %s3635_s11 }
 0xfa9   :  { %v1990_v14 = vpop.xlane.xlu0 %1989 }
 0xfaa   :  { %v1991_v15 = vsub.f32 %v1984_v6, %v1990_v14 }
 0xfac   :  { %v1992_v16 = vmul.f32 1.442695, %v1991_v15 }
 0xfae   :  { %3208 = vpow2.f32 %v1992_v16 }
 0xfb8   :  { %v3209_v17 = vpop.eup %3208 }
 0xfb9   :  { %v1994_v18 = vsel %vm604_vm2, %v3209_v17, 0.0 }
 0xfba   :  { %1995 = vadd.xlane.f32.xlu0 %v1994_v18 }
0x1012   :  { %v2481_v19 = vpop.xlane.xlu1 %2480 }
0x1013   :  { %v2482_v20 = vsub.f32 %v2475_v11, %v2481_v19 }
0x1015   :  { %v2483_v21 = vmul.f32 1.442695, %v2482_v20 }
0x1016   :  { %v2491_v22 = vpop.permute.xlu1 %2490 }
0x1017   :  { %3210 = vpow2.f32 %v2483_v21  ;;  %3076 = vmatpush3.msra.mxu1 %v2491_v22 }
0x1021   :  { %v3211_v24 = vpop.eup %3210 }
0x1022   :  { %v2485_v25 = vsel %vm604_vm2, %v3211_v24, 0.0 }
0x1023   :  { %2486 = vadd.xlane.f32.xlu0 %v2485_v25 }
0x1039   :  { %2000 = vrot.lane.b32.xlu0 %v4119_v38, %s3634_s16  ;;  %v3179_v38 = vld [vmem:[#allocation22 + $0x8] sm:$0xff]  }
0x1047   :  { %v1996_v26 = vpop.xlane.xlu0 %1995 }
0x1048   :  { %3212 = vrcp.f32 %v1996_v26 }
0x1052   :  { %v3213_v28 = vpop.eup %3212 }
0x1053   :  { %v1998_v30 = vmul.f32 %v3213_v28, %v3209_v17 }
0x10b0   :  { %v2487_v27 = vpop.xlane.xlu0 %2486 }
0x10b1   :  { %3214 = vrcp.f32 %v2487_v27 }
0x10b4   :  { %v2001_v31 = vpop.permute.xlu0 %2000 }
0x10b5   :  { %3035 = vmatpush3.msra.mxu0 %v2001_v31 }
0x10b6   :  { %3037 = vmatmul.mubr.msk.f32.vlgmr.msra.gmra.mrb[20].mxu0 %vm604_vm2, %v1998_v30  ;;  %3039 = vmatprep.subr.bf16.mxu0 %v3632_v0 }
0x10b7   :  { %3040 = vmatpush3.bf16.msra.mxu0 %v3176_v29  ;;  %3043 = vmatprep.mubr.msk.f32.mxu0 %vm3633_vm0, %v3632_v0 }
0x10b8   :  { %3041 = vmatprep.subr.bf16.mxu0 %v3632_v0 }
0x10bb   :  { %v3215_v33 = vpop.eup %3214  ;;  %3042 = vmatpush3.bf16.msra.mxu0 %v3177_v32 }
0x10bc   :  { %v2489_v34 = vmul.f32 %v3215_v33, %v3211_v24  ;;  %3046 = vmatprep.subr.bf16.mxu0 %v3632_v0 }
0x10be   :  { %3078 = vmatmul.mubr.msk.f32.vlgmr.msra.gmra.mrb[26].mxu1 %vm604_vm2, %v2489_v34 }
0x1189   :  { %v2072_v36 = vpop.f32.mrb[20].mxu0 }
0x118a   :  { %v3038_v37 = vpop.f32.mrb[21].mxu0  ;;  %3044 = vmatmul.mubr.msk.f32.vlgmr.msra.gmra.mrb[22].mxu0 %vm527_vm1, %v2072_v36 }
0x118b   :  { %3047 = vmatpush3.bf16.msra.mxu0 %v3178_v35  ;;  %3050 = vmatprep.mubr.msk.f32.mxu0 %vm3633_vm0, %v3632_v0 }
0x118c   :  { %3048 = vmatprep.subr.bf16.mxu0 %v3632_v0 }
0x118f   :  { %3049 = vmatpush3.bf16.msra.mxu0 %v3179_v38 }
0x1190   :  { %3063 = vmatprep.subr.bf16.mxu0 %v3632_v0 }
0x1191   :  { %v2562_v41 = vpop.f32.mrb[26].mxu1 }
0x1192   :  { %3051 = vmatmul.mubr.msk.f32.vlgmr.msra.gmra.mrb[24].mxu0 %vm527_vm1, %v1906_v4  ;;  %v3079_v42 = vpop.f32.mrb[27].mxu1 }
0x1193   :  { %3064 = vmatpush3.bf16.msra.mxu0 %v3180_v39  ;;  %3067 = vmatprep.mubr.msk.f32.mxu0 %vm3633_vm0, %v3632_v0 }
0x1194   :  { %3065 = vmatprep.subr.bf16.mxu0 %v3632_v0 }
0x1197   :  { %3066 = vmatpush3.bf16.msra.mxu0 %v3181_v43 }
0x1198   :  { %3080 = vmatprep.subr.bf16.mxu0 %v3632_v0 }
0x119a   :  { %3068 = vmatmul.mubr.msk.f32.vlgmr.msra.gmra.mrb[26].mxu0 %vm527_vm1, %v4151_v9 }
0x119b   :  { %3081 = vmatpush3.bf16.msra.mxu0 %v3182_v44  ;;  %3084 = vmatprep.mubr.msk.f32.mxu0 %vm3633_vm0, %v3632_v0 }
0x119c   :  { %3082 = vmatprep.subr.bf16.mxu0 %v3632_v0 }
0x119f   :  { %3083 = vmatpush3.bf16.msra.mxu0 %v3183_v45 }
0x11a2   :  { %3085 = vmatmul.mubr.msk.f32.vlgmr.msra.gmra.mrb[28].mxu0 %vm527_vm1, %v2562_v41 }
0x125d   :  { %v2125_v46 = vpop.f32.mrb[22].mxu0 }
0x125e   :  { %v3045_v47 = vpop.f32.mrb[23].mxu0 }
0x1265   :  { %v2178_v48 = vpop.f32.mrb[24].mxu0 }
0x1266   :  { %v2179_v49 = vadd.f32 %v2178_v48, %v2125_v46  ;;  %v3052_v50 = vpop.f32.mrb[25].mxu0 }
0x126d   :  { %v2396_v51 = vpop.f32.mrb[26].mxu0 }
0x126e   :  { %v2400_v52 = vadd.f32 %v2396_v51, %v2179_v49  ;;  %v3069_v53 = vpop.f32.mrb[27].mxu0 }
0x1275   :  { %v2615_v40 = vpop.f32.mrb[28].mxu0 }
0x1276   :  { %v2619_v55 = vadd.f32 %v2615_v40, %v2400_v52  ;;  %v3086_v56 = vpop.f32.mrb[29].mxu0 }
0x1278   :  { %v2626_v57 = vadd.f32 %v2780_v54, %v2619_v55 }
0x127a   :  { %v2627_v58 = vadd.f32 %v2626_v57, %v3944_v23 }
0x127c   :  { %2628 = vadd.xlane.f32.xlu1 %v2627_v58 }
0x1309   :  { %v2629_v0 = vpop.xlane.xlu1 %2628 }
0x130a   :  { %v2631_v59 = vmul.f32 0.0078125, %v2629_v0 }
0x130c   :  { %v2632_v60 = vsub.f32 %v2627_v58, %v2631_v59 }
0x130e   :  { %v2633_v61 = vmul.f32 %v2632_v60, %v2632_v60 }
0x1310   :  { %2634 = vadd.xlane.f32.xlu0 %v2633_v61 }
0x139d   :  { %v2635_v62 = vpop.xlane.xlu0 %2634 }
0x139e   :  { %v2636_v63 = vmul.f32 0.0078125, %v2635_v62 }
0x13a0   :  { %v2637_v1 = vadd.f32 1e-05, %v2636_v63 }
0x13a2   :  { %3216 = vrsqrt.f32 %v2637_v1 }
0x13ac   :  { %v3217_v2 = vpop.eup %3216 }
0x13ad   :  { %v2639_v4 = vmul.f32 %v3217_v2, %v2632_v60 }
0x13af   :  { %v2647_v6 = vmul.f32 %v2781_v3, %v2639_v4 }
0x13b1   :  { %v2655_v7 = vadd.f32 %v2782_v5, %v2647_v6 }
0x13b3   :  { %2656 = vst [vmem:[#allocation28] sm:$0xff] %v2655_v7 }
0x13b4   :  { %3581 = shalt.err (!%p3578_p6)
}
0x13b5   :  { %s3582_s18 = scalar_lea.hbm %s4213_s17, 128 }
0x13b6   :  { %p3583_p7 = scmp.ne.s32.totalorder %s4213_s17, %s3582_s18  ;;  %p3586_p8 = scmp.lt.u32.totalorder %s3582_s18, %s4213_s17 }
0x13b8   :  { %p3588_p9 = pnand %p3586_p8, %p3583_p7 }
0x13ba   :  { %3591 = shalt.err (!%p3588_p9)
}
0x13bb   :  { %2666 = dma.vmem_to_hbm [thread:$0]  %s2664_s3, 128, %s4213_s17, [#allocation4]  }
0x13bc   :  { %3610 = dma.done.wait [#allocation4], 128  }
0x13bd   :  { %3611 = vsyncadd [#allocation4], 4294967168 }
0x13be   :  { %2670 = vsyncpa [#allocation3], 1 }
0x13bf   :  { %2671 = vsyncpa [#allocation6], 1 }
0x13c0   :  { %2672 = vsyncpa [#allocation9], 1 }
0x13c1   :  { %2673 = vsyncpa [#allocation12], 1 }
0x13c2   :  { %2674 = vsyncpa [#allocation15], 1 }
0x13c3   :  { %2675 = vsyncpa [#allocation18], 1 }
0x13c4   :  { %2676 = vsyncpa [#allocation21], 1 }
0x13c5   :  { %2677 = vsyncpa [#allocation24], 1 }
0x13c6   :  { %2678 = vsyncpa [#allocation27], 1 }
0x13c7   :  { %2679 = vsyncpa [#allocation4], 1 }

</bundles_post_ra>
